<compile_context>
chip_gen: v7x
topology: tpu7x:2x2x1
jax: 0.10.0
libtpu: 0.0.40
codegen_flags: <defaults>
</compile_context>

<pallas_src>
import jax
import jax.numpy as jnp
from jax.experimental import pallas as pl
from jax.experimental.pallas import tpu as pltpu

HIDDEN_DIM = 768
LABEL_NUMS = 4
TOKEN_MAX_LENGTH = 32


def _t1_head_kernel(cls_ref, wpq_ref, wps_ref, bp_ref, wd_ref, bd_ref, out_ref):
    # cls_ref : [B, H]   bf16  [CLS] hidden states (sliced/cast in the wrapper)
    # wpq_ref : [H, H]   int8  pooler weight, per-output-column symmetric quant
    # wps_ref : [1, H]   f32   per-output-column dequant scales
    # bp_ref  : [1, H]   f32   pooler bias
    # wd_ref  : [H, L]   bf16  decoder weight (unpadded, L = 4)
    # bd_ref  : [1, L]   f32   decoder bias
    # out_ref : [B, L]   f32   sigmoid logits
    cls = cls_ref[...]

    # Dequantize the weight to bf16 WITHOUT the scale (int8 magnitudes are
    # exactly representable in bf16); fold the per-column scale into the f32
    # accumulator instead, so the scale multiply is B*H work rather than H*H.
    wp = wpq_ref[...].astype(jnp.bfloat16)

    acc = jnp.dot(cls, wp, preferred_element_type=jnp.float32)        # [B, H] f32
    pooled = jnp.tanh(acc * wps_ref[...] + bp_ref[...])               # [B, H] f32

    logits = jnp.dot(pooled.astype(jnp.bfloat16), wd_ref[...],
                     preferred_element_type=jnp.float32) + bd_ref[...]
    out_ref[...] = jax.nn.sigmoid(logits).astype(out_ref.dtype)


def prepare_params(pooler_w, pooler_b, decoder_w, decoder_b):
    """One-time (load-time) parameter prep.

    Returns (wp_int8, wp_scale_f32, bp_f32, wd_bf16, bd_f32).
    """
    pooler_w = pooler_w.astype(jnp.float32)
    col_max = jnp.max(jnp.abs(pooler_w), axis=0, keepdims=True)        # [1, H]
    wp_scale = jnp.maximum(col_max, 1e-8) / 127.0                      # [1, H] f32
    wp_q = jnp.clip(jnp.round(pooler_w / wp_scale), -127, 127).astype(jnp.int8)
    bp = pooler_b.reshape(1, -1).astype(jnp.float32)                   # [1, H]
    wd = decoder_w.astype(jnp.bfloat16)                                # [H, L]
    bd = decoder_b.reshape(1, -1).astype(jnp.float32)                  # [1, L]
    return wp_q, wp_scale, bp, wd, bd


def t1_forward(last_hidden_state, wp_q, wp_scale, bp, wd, bd):
    """last_hidden_state: [B, S, H] (stand-in for the BERT encoder output).

    Returns sigmoid logits [B, LABEL_NUMS], matching T1.forward's return value.
    Any B is supported; larger B (64-128) amortizes the fixed weight stream.
    """
    B, S, H = last_hidden_state.shape
    L = wd.shape[1]
    assert H == HIDDEN_DIM and wp_q.shape == (H, H)

    # [CLS] token (position 0), cast to the MXU-native bf16 input format.
    # Tiny (B*H*2 bytes) compared to the old (B, 8, H) f32 block fetch.
    cls = last_hidden_state[:, 0, :].astype(jnp.bfloat16)              # [B, H]

    return pl.pallas_call(
        _t1_head_kernel,
        out_shape=jax.ShapeDtypeStruct((B, L), jnp.float32),
        grid_spec=pltpu.PrefetchScalarGridSpec(
            num_scalar_prefetch=0,
            grid=(1,),                    # single step: total weights ~0.6 MiB
            in_specs=[
                pl.BlockSpec((B, H), lambda n: (0, 0)),   # CLS activations
                pl.BlockSpec((H, H), lambda n: (0, 0)),   # Wp int8
                pl.BlockSpec((1, H), lambda n: (0, 0)),   # Wp scales
                pl.BlockSpec((1, H), lambda n: (0, 0)),   # bp
                pl.BlockSpec((H, L), lambda n: (0, 0)),   # Wd (unpadded)
                pl.BlockSpec((1, L), lambda n: (0, 0)),   # bd
            ],
            out_specs=pl.BlockSpec((B, L), lambda n: (0, 0)),
        ),
        compiler_params=pltpu.CompilerParams(
            dimension_semantics=("arbitrary",),
        ),
    )(cls, wp_q, wp_scale, bp, wd, bd)


if __name__ == "__main__":
    key = jax.random.PRNGKey(0)
    k_x, k_wp, k_bp, k_wd, k_bd = jax.random.split(key, 5)

    batch = 16   # kernel handles any B; larger B amortizes the weight stream
    last_hidden = jax.random.normal(
        k_x, (batch, TOKEN_MAX_LENGTH, HIDDEN_DIM), dtype=jnp.float32
    )

    # Deterministic synthetic parameters (shapes from the module's __init__):
    # BERT pooler dense: Linear(768, 768); decoder: Linear(768, 4).
    pooler_w = jax.random.normal(k_wp, (HIDDEN_DIM, HIDDEN_DIM), jnp.float32) * 0.02
    pooler_b = jax.random.normal(k_bp, (1, HIDDEN_DIM), jnp.float32) * 0.02
    decoder_w = jax.random.normal(k_wd, (HIDDEN_DIM, LABEL_NUMS), jnp.float32) * 0.02
    decoder_b = jax.random.normal(k_bd, (1, LABEL_NUMS), jnp.float32) * 0.02

    params = prepare_params(pooler_w, pooler_b, decoder_w, decoder_b)

    logits = t1_forward(last_hidden, *params)
    logits = jax.block_until_ready(logits)

    # Reference check in plain f32 JAX (same math, outside Pallas).
    # Tolerance relaxed for bf16 activations + int8-quantized pooler weight
    # (MXU accumulation stays f32).
    pooled_ref = jnp.tanh(last_hidden[:, 0, :] @ pooler_w + pooler_b)
    ref = jax.nn.sigmoid(pooled_ref @ decoder_w + decoder_b)
    assert logits.shape == (batch, LABEL_NUMS)
    assert jnp.allclose(logits, ref, atol=2e-2, rtol=0.0), \
        float(jnp.max(jnp.abs(logits - ref)))

    print("KERNEL_OK")
</pallas_src>

<mosaic_0001>
module attributes {stable_mosaic.version = 11 : i64} {
  func.func @_t1_head_kernel(%arg0: i32, %arg1: memref<16x768xbf16, #tpu.memory_space<vmem>>, %arg2: memref<768x768xi8, #tpu.memory_space<vmem>>, %arg3: memref<1x768xf32, #tpu.memory_space<vmem>>, %arg4: memref<1x768xf32, #tpu.memory_space<vmem>>, %arg5: memref<768x4xbf16, #tpu.memory_space<vmem>>, %arg6: memref<1x4xf32, #tpu.memory_space<vmem>>, %arg7: memref<16x4xf32, #tpu.memory_space<vmem>>) attributes {dimension_semantics = [#tpu.dimension_semantics<arbitrary>], iteration_bounds = array<i64: 1>, scalar_prefetch = 0 : i64, scratch_operands = 0 : i64, tpu.core_type = #tpu.core_type<tc>, window_params = [{pipeline_mode = #tpu.pipeline_mode<synchronous>, transform_indices = @transform_0, window_bounds = array<i64: 16, 768>}, {pipeline_mode = #tpu.pipeline_mode<synchronous>, transform_indices = @transform_1, window_bounds = array<i64: 768, 768>}, {pipeline_mode = #tpu.pipeline_mode<synchronous>, transform_indices = @transform_2, window_bounds = array<i64: 1, 768>}, {pipeline_mode = #tpu.pipeline_mode<synchronous>, transform_indices = @transform_3, window_bounds = array<i64: 1, 768>}, {pipeline_mode = #tpu.pipeline_mode<synchronous>, transform_indices = @transform_4, window_bounds = array<i64: 768, 4>}, {pipeline_mode = #tpu.pipeline_mode<synchronous>, transform_indices = @transform_5, window_bounds = array<i64: 1, 4>}, {pipeline_mode = #tpu.pipeline_mode<synchronous>, transform_indices = @transform_6, window_bounds = array<i64: 16, 4>}]} {
    %c0 = arith.constant 0 : index
    %c0_0 = arith.constant 0 : index
    %0 = vector.load %arg1[%c0, %c0_0] : memref<16x768xbf16, #tpu.memory_space<vmem>>, vector<16x768xbf16>
    %c0_1 = arith.constant 0 : index
    %c0_2 = arith.constant 0 : index
    %1 = vector.load %arg2[%c0_1, %c0_2] : memref<768x768xi8, #tpu.memory_space<vmem>>, vector<768x768xi8>
    %2 = arith.sitofp %1 : vector<768x768xi8> to vector<768x768xbf16>
    %cst = arith.constant dense<0.000000e+00> : vector<16x768xf32>
    %3 = tpu.matmul %0, %2, %cst {dimension_numbers = #tpu.dot_dimension_numbers<[1], [0], [0], [1], [0, 0, 1, 1], [], []>} : vector<16x768xbf16>, vector<768x768xbf16>, vector<16x768xf32> -> vector<16x768xf32>
    %c0_3 = arith.constant 0 : index
    %c0_4 = arith.constant 0 : index
    %4 = vector.load %arg3[%c0_3, %c0_4] : memref<1x768xf32, #tpu.memory_space<vmem>>, vector<1x768xf32>
    %5 = vector.broadcast %4 : vector<1x768xf32> to vector<16x768xf32>
    %6 = arith.mulf %3, %5 : vector<16x768xf32>
    %c0_5 = arith.constant 0 : index
    %c0_6 = arith.constant 0 : index
    %7 = vector.load %arg4[%c0_5, %c0_6] : memref<1x768xf32, #tpu.memory_space<vmem>>, vector<1x768xf32>
    %8 = vector.broadcast %7 : vector<1x768xf32> to vector<16x768xf32>
    %9 = arith.addf %6, %8 : vector<16x768xf32>
    %10 = math.tanh %9 : vector<16x768xf32>
    %11 = arith.truncf %10 : vector<16x768xf32> to vector<16x768xbf16>
    %c0_7 = arith.constant 0 : index
    %c0_8 = arith.constant 0 : index
    %12 = vector.load %arg5[%c0_7, %c0_8] : memref<768x4xbf16, #tpu.memory_space<vmem>>, vector<768x4xbf16>
    %cst_9 = arith.constant dense<0.000000e+00> : vector<16x4xf32>
    %13 = tpu.matmul %11, %12, %cst_9 {dimension_numbers = #tpu.dot_dimension_numbers<[1], [0], [0], [1], [0, 0, 1, 1], [], []>} : vector<16x768xbf16>, vector<768x4xbf16>, vector<16x4xf32> -> vector<16x4xf32>
    %c0_10 = arith.constant 0 : index
    %c0_11 = arith.constant 0 : index
    %14 = vector.load %arg6[%c0_10, %c0_11] : memref<1x4xf32, #tpu.memory_space<vmem>>, vector<1x4xf32>
    %15 = vector.broadcast %14 : vector<1x4xf32> to vector<16x4xf32>
    %16 = arith.addf %13, %15 : vector<16x4xf32>
    %17 = arith.negf %16 : vector<16x4xf32>
    %18 = math.exp %17 : vector<16x4xf32>
    %cst_12 = arith.constant 1.000000e+00 : f32
    %19 = vector.broadcast %cst_12 : f32 to vector<16x4xf32>
    %20 = arith.addf %19, %18 : vector<16x4xf32>
    %21 = arith.divf %19, %20 : vector<16x4xf32>
    %c0_13 = arith.constant 0 : index
    %c0_14 = arith.constant 0 : index
    %22 = vector.load %arg7[%c0_13, %c0_14] : memref<16x4xf32, #tpu.memory_space<vmem>>, vector<16x4xf32>
    tpu.vector_store %arg7[%c0_13, %c0_14], %21 {strides = array<i32>} : memref<16x4xf32, #tpu.memory_space<vmem>>, vector<16x4xf32>,
    return
  }
  func.func @transform_0(%arg0: i32) -> (i32, i32) {
    %c0_i32 = arith.constant 0 : i32
    %c0_i32_0 = arith.constant 0 : i32
    %c0_i32_1 = arith.constant 0 : i32
    return %c0_i32, %c0_i32_0 : i32, i32
  }
  func.func @transform_1(%arg0: i32) -> (i32, i32) {
    %c0_i32 = arith.constant 0 : i32
    %c0_i32_0 = arith.constant 0 : i32
    %c0_i32_1 = arith.constant 0 : i32
    return %c0_i32, %c0_i32_0 : i32, i32
  }
  func.func @transform_2(%arg0: i32) -> (i32, i32) {
    %c0_i32 = arith.constant 0 : i32
    %c0_i32_0 = arith.constant 0 : i32
    %c0_i32_1 = arith.constant 0 : i32
    return %c0_i32, %c0_i32_0 : i32, i32
  }
  func.func @transform_3(%arg0: i32) -> (i32, i32) {
    %c0_i32 = arith.constant 0 : i32
    %c0_i32_0 = arith.constant 0 : i32
    %c0_i32_1 = arith.constant 0 : i32
    return %c0_i32, %c0_i32_0 : i32, i32
  }
  func.func @transform_4(%arg0: i32) -> (i32, i32) {
    %c0_i32 = arith.constant 0 : i32
    %c0_i32_0 = arith.constant 0 : i32
    %c0_i32_1 = arith.constant 0 : i32
    return %c0_i32, %c0_i32_0 : i32, i32
  }
  func.func @transform_5(%arg0: i32) -> (i32, i32) {
    %c0_i32 = arith.constant 0 : i32
    %c0_i32_0 = arith.constant 0 : i32
    %c0_i32_1 = arith.constant 0 : i32
    return %c0_i32, %c0_i32_0 : i32, i32
  }
  func.func @transform_6(%arg0: i32) -> (i32, i32) {
    %c0_i32 = arith.constant 0 : i32
    %c0_i32_0 = arith.constant 0 : i32
    %c0_i32_1 = arith.constant 0 : i32
    return %c0_i32, %c0_i32_0 : i32, i32
  }
}

</mosaic_0001>

<bundles_post_ra>
// kernel: tpu_custom_call.1
= control target key start
LH: loop header
LB: loop body
LE: loop exit
PB: predicated region body
PF: predicated region fallthrough
CT: control target
= control target key end

     0   :  { %11 = vsyncpa [#allocation3], 0  ;;  %s1798_s21 = smov [#allocation2]   ;;  %s2095_s0 = inlined_call_operand.vmem [shape: bf16[16,768], index: 0, kind: input, shape index: {}]   ;;  %s2096_s1 = inlined_call_operand.hbm [shape: s8[768,768], index: 1, kind: input, shape index: {}]   ;;  %s2097_s2 = inlined_call_operand.vmem [shape: f32[1,768], index: 2, kind: input, shape index: {}]   ;;  %s2098_s3 = inlined_call_operand.vmem [shape: f32[1,768], index: 3, kind: input, shape index: {}]   ;;  %s2099_s4 = inlined_call_operand.vmem [shape: bf16[768,4], index: 4, kind: input, shape index: {}]   ;;  %s2100_s5 = inlined_call_operand.vmem [shape: f32[1,4], index: 5, kind: input, shape index: {}]   ;;  %s2101_s6 = inlined_call_operand.vmem [shape: f32[16,4], index: 6, kind: output, shape index: {}]  }
   0x1   :  { %s19_s22 = sshll.u32 %s1798_s21, 4  ;;  %s1774_s25 = scalar_lea.hbm %s2096_s1, 18432  ;;  %s20_s22 = int_to_ptr.vmem [resolvable:$true] %s19_s22 }
   0x2   :  { %p1775_p0 = scmp.ne.s32.totalorder %s2096_s1, %s1774_s25  ;;  %p1778_p1 = scmp.lt.u32.totalorder %s1774_s25, %s2096_s1 }
   0x4   :  { %p1780_p2 = pnand %p1778_p1, %p1775_p0 }
   0x6   :  { %1783 = shalt.err (!%p1780_p2)
}
   0x7   :  { %s1784_s30 = scalar_lea.vmem %s20_s22, 18432  ;;  %p1789_p4 = scmp.lt.s32.totalorder %s20_s22, %s20_s22 }
   0x8   :  { %p1785_p3 = scmp.ne.s32.totalorder %s20_s22, %s1784_s30  ;;  %p1790_p5 = scmp.lt.s32.totalorder %s1784_s30, %s1784_s30 }
   0xa   :  { %p1791_p6 = por %p1790_p5, %p1789_p4 }
   0xc   :  { %p1792_p7 = pnand %p1791_p6, %p1785_p3 }
   0xe   :  { %1795 = shalt.err (!%p1792_p7)
}
   0xf   :  { %s1799_s7 = smov 768   ;;  %s1800_s8 = smov 48  }
  0x10   :  { %25 = dma.hbm_to_vmem [thread:$0]  %s2096_s1, 18432, %s20_s22, [#allocation3], %s1799_s7, %s1799_s7, %s1800_s8  }
  0x11   :  { %1796 = dma.done.wait [#allocation3], 18432  }
  0x12   :  { %1797 = vsyncadd [#allocation3], 4294948864  ;;  %v45_v0 = vld [vmem:[#allocation2 + $0x8] sm:$0xff]  ;;  %v44_v2 = vld [vmem:[#allocation2] sm:$0xff]  ;;  %vm1525_vm0 = vcmask 31744  }
  0x13   :  { %v93_v1 = vld [vmem:[#allocation2 + $0x188] sm:$0xff]  ;;  %v189_v3 = vunpack.c.l.s8.bf16 %v45_v0  ;;  %v195_v4 = vunpack.c.h.s8.bf16 %v45_v0  ;;  %v92_v7 = vld [vmem:[#allocation2 + $0x180] sm:$0xff]  ;;  %v188_v8 = vunpack.c.l.s8.bf16 %v44_v2  ;;  %v51_v10 = vld [vmem:[#allocation2 + $0x38] sm:$0xff]  ;;  %v194_v12 = vunpack.c.h.s8.bf16 %v44_v2 }
  0x14   :  { %v285_v5 = vunpack.c.l.s8.bf16 %v93_v1  ;;  %v291_v6 = vunpack.c.h.s8.bf16 %v93_v1  ;;  %v284_v9 = vunpack.c.l.s8.bf16 %v92_v7  ;;  %v99_v11 = vld [vmem:[#allocation2 + $0x1b8] sm:$0xff]  ;;  %v290_v13 = vunpack.c.h.s8.bf16 %v92_v7  ;;  %v50_v16 = vld [vmem:[#allocation2 + $0x30] sm:$0xff]  ;;  %v57_v22 = vld [vmem:[#allocation2 + $0x68] sm:$0xff] }
  0x15   :  { %506 = vmatprep.subr.bf16.mxu1 %v189_v3  ;;  %v201_v14 = vunpack.c.l.s8.bf16 %v51_v10  ;;  %v297_v15 = vunpack.c.l.s8.bf16 %v99_v11  ;;  %v98_v17 = vld [vmem:[#allocation2 + $0x1b0] sm:$0xff]  ;;  %v200_v18 = vunpack.c.l.s8.bf16 %v50_v16  ;;  %v207_v20 = vunpack.c.h.s8.bf16 %v51_v10  ;;  %v105_v23 = vld [vmem:[#allocation2 + $0x1e8] sm:$0xff]  ;;  %v1851_v24 = vld [vmem:[%s2095_s0 + $0x4] ss:$24 sps:$4 sm:$0xff]  }
  0x16   :  { %549 = vmatprep.subr.bf16.mxu0 %v285_v5  ;;  %507 = vmatpush1.bf16.msra.mxu1 %v188_v8  ;;  %v296_v19 = vunpack.c.l.s8.bf16 %v98_v17  ;;  %v303_v21 = vunpack.c.h.s8.bf16 %v99_v11  ;;  %v206_v25 = vunpack.c.h.s8.bf16 %v50_v16  ;;  %v302_v26 = vunpack.c.h.s8.bf16 %v98_v17  ;;  %v1856_v27 = vld [vmem:[%s2095_s0 + $0xc] ss:$24 sps:$4 sm:$0xff]   ;;  %v63_v36 = vld [vmem:[#allocation2 + $0x98] sm:$0xff]  ;;  %v62_v42 = vld [vmem:[#allocation2 + $0x90] sm:$0xff] }
  0x17   :  { %550 = vmatpush1.bf16.msra.mxu0 %v284_v9  ;;  %508 = vmatprep.subr.bf16.mxu1 %v195_v4  ;;  %v213_v28 = vunpack.c.l.s8.bf16 %v57_v22  ;;  %v309_v29 = vunpack.c.l.s8.bf16 %v105_v23  ;;  %v56_v30 = vld [vmem:[#allocation2 + $0x60] sm:$0xff]  ;;  %v219_v34 = vunpack.c.h.s8.bf16 %v57_v22  ;;  %v315_v35 = vunpack.c.h.s8.bf16 %v105_v23  ;;  %v111_v37 = vld [vmem:[#allocation2 + $0x218] sm:$0xff]  ;;  %v110_v43 = vld [vmem:[#allocation2 + $0x210] sm:$0xff] }
  0x18   :  { %551 = vmatprep.subr.bf16.mxu0 %v291_v6  ;;  %v104_v31 = vld [vmem:[#allocation2 + $0x1e0] sm:$0xff]  ;;  %538 = vmatprep.mubr.bf16.mxu1 %v1851_v24  ;;  %v212_v32 = vunpack.c.l.s8.bf16 %v56_v30  ;;  %v218_v38 = vunpack.c.h.s8.bf16 %v56_v30  ;;  %v225_v40 = vunpack.c.l.s8.bf16 %v63_v36  ;;  %v321_v41 = vunpack.c.l.s8.bf16 %v111_v37  ;;  %v69_v48 = vld [vmem:[#allocation2 + $0xc8] sm:$0xff]  ;;  %v75_v60 = vld [vmem:[#allocation2 + $0xf8] sm:$0xff] }
  0x19   :  { %581 = vmatprep.mubr.bf16.mxu0 %v1856_v27  ;;  %v308_v33 = vunpack.c.l.s8.bf16 %v104_v31  ;;  %v314_v39 = vunpack.c.h.s8.bf16 %v104_v31  ;;  %v224_v44 = vunpack.c.l.s8.bf16 %v62_v42  ;;  %v320_v45 = vunpack.c.l.s8.bf16 %v110_v43  ;;  %v117_v49 = vld [vmem:[#allocation2 + $0x248] sm:$0xff]  ;;  %v68_v54 = vld [vmem:[#allocation2 + $0xc0] sm:$0xff]  ;;  %v123_v61 = vld [vmem:[#allocation2 + $0x278] sm:$0xff] }
  0x1a   :  { %509 = vmatpush1.bf16.msra.mxu1 %v194_v12  ;;  %v231_v46 = vunpack.c.h.s8.bf16 %v63_v36  ;;  %v327_v47 = vunpack.c.h.s8.bf16 %v111_v37  ;;  %v230_v50 = vunpack.c.h.s8.bf16 %v62_v42  ;;  %v326_v51 = vunpack.c.h.s8.bf16 %v110_v43  ;;  %v116_v55 = vld [vmem:[#allocation2 + $0x240] sm:$0xff]  ;;  %v74_v62 = vld [vmem:[#allocation2 + $0xf0] sm:$0xff]  ;;  %v81_v8 = vld [vmem:[#allocation2 + $0x128] sm:$0xff] }
  0x1b   :  { %552 = vmatpush1.bf16.msra.mxu0 %v290_v13  ;;  %510 = vmatprep.subr.bf16.mxu1 %v201_v14  ;;  %v237_v52 = vunpack.c.l.s8.bf16 %v69_v48  ;;  %v333_v53 = vunpack.c.l.s8.bf16 %v117_v49  ;;  %v236_v56 = vunpack.c.l.s8.bf16 %v68_v54  ;;  %v332_v57 = vunpack.c.l.s8.bf16 %v116_v55  ;;  %v122_v63 = vld [vmem:[#allocation2 + $0x270] sm:$0xff]  ;;  %v129_v9 = vld [vmem:[#allocation2 + $0x2a8] sm:$0xff]  ;;  %v80_v10 = vld [vmem:[#allocation2 + $0x120] sm:$0xff] }
  0x1c   :  { %553 = vmatprep.subr.bf16.mxu0 %v297_v15  ;;  %v243_v58 = vunpack.c.h.s8.bf16 %v69_v48  ;;  %v339_v59 = vunpack.c.h.s8.bf16 %v117_v49  ;;  %v242_v0 = vunpack.c.h.s8.bf16 %v68_v54  ;;  %v338_v1 = vunpack.c.h.s8.bf16 %v116_v55  ;;  %v128_v11 = vld [vmem:[#allocation2 + $0x2a0] sm:$0xff]  ;;  %v86_v22 = vld [vmem:[#allocation2 + $0x150] sm:$0xff]  ;;  %v53_v49 = vld [vmem:[#allocation2 + $0x48] sm:$0xff] }
  0x1d   :  { %v249_v2 = vunpack.c.l.s8.bf16 %v75_v60  ;;  %v345_v3 = vunpack.c.l.s8.bf16 %v123_v61  ;;  %v248_v4 = vunpack.c.l.s8.bf16 %v74_v62  ;;  %v344_v5 = vunpack.c.l.s8.bf16 %v122_v63  ;;  %v134_v23 = vld [vmem:[#allocation2 + $0x2d0] sm:$0xff]  ;;  %v140_v36 = vld [vmem:[#allocation2 + $0x300] sm:$0xff] }
  0x1e   :  { %511 = vmatpush1.bf16.msra.mxu1 %v200_v18  ;;  %v255_v6 = vunpack.c.h.s8.bf16 %v75_v60  ;;  %v351_v7 = vunpack.c.h.s8.bf16 %v123_v61  ;;  %v254_v12 = vunpack.c.h.s8.bf16 %v74_v62  ;;  %v350_v13 = vunpack.c.h.s8.bf16 %v122_v63  ;;  %v46_v37 = vld [vmem:[#allocation2 + $0x10] sm:$0xff]  ;;  %v1863_v42 = vld [vmem:[%s2095_s0] ss:$24 sps:$4 sm:$0xff]   ;;  %v153_v61 = vld [vmem:[#allocation2 + $0x368] sm:$0xff] }
  0x1f   :  { %554 = vmatpush1.bf16.msra.mxu0 %v296_v19  ;;  %512 = vmatprep.subr.bf16.mxu1 %v207_v20  ;;  %v261_v14 = vunpack.c.l.s8.bf16 %v81_v8  ;;  %v357_v15 = vunpack.c.l.s8.bf16 %v129_v9  ;;  %v260_v16 = vunpack.c.l.s8.bf16 %v80_v10  ;;  %v356_v17 = vunpack.c.l.s8.bf16 %v128_v11  ;;  %v87_v20 = vld [vmem:[#allocation2 + $0x158] sm:$0xff]  ;;  %v1868_v43 = vld [vmem:[%s2095_s0 + $0x8] ss:$24 sps:$4 sm:$0xff]   ;;  %v146_v55 = vld [vmem:[#allocation2 + $0x330] sm:$0xff] }
  0x20   :  { %555 = vmatprep.subr.bf16.mxu0 %v303_v21  ;;  %v267_v18 = vunpack.c.h.s8.bf16 %v81_v8  ;;  %v363_v19 = vunpack.c.h.s8.bf16 %v129_v9  ;;  %v135_v21 = vld [vmem:[#allocation2 + $0x2d8] sm:$0xff]  ;;  %v272_v30 = vunpack.c.l.s8.bf16 %v86_v22  ;;  %v368_v31 = vunpack.c.l.s8.bf16 %v134_v23 }
  0x21   :  { %v203_v54 = vunpack.c.l.s8.bf16 %v53_v49  ;;  %v209_v60 = vunpack.c.h.s8.bf16 %v53_v49  ;;  %v59_v62 = vld [vmem:[#allocation2 + $0x78] sm:$0xff]  ;;  %v398_v63 = vunpack.c.h.s8.bf16 %v146_v55  ;;  %v177_v49 = vld [vmem:[#allocation2 + $0x428] sm:$0xff] }
  0x22   :  { %513 = vmatpush1.bf16.msra.mxu1 %v206_v25  ;;  %v266_v25 = vunpack.c.h.s8.bf16 %v80_v10  ;;  %v221_v8 = vunpack.c.h.s8.bf16 %v59_v62  ;;  %v159_v9 = vld [vmem:[#allocation2 + $0x398] sm:$0xff]  ;;  %v65_v10 = vld [vmem:[#allocation2 + $0xa8] sm:$0xff] }
  0x23   :  { %556 = vmatpush1.bf16.msra.mxu0 %v302_v26  ;;  %514 = vmatprep.subr.bf16.mxu1 %v213_v28  ;;  %v362_v26 = vunpack.c.h.s8.bf16 %v128_v11  ;;  %v273_v28 = vunpack.c.l.s8.bf16 %v87_v20 }
  0x24   :  { %557 = vmatprep.subr.bf16.mxu0 %v309_v29  ;;  %v369_v29 = vunpack.c.l.s8.bf16 %v135_v21 }
  0x26   :  { %515 = vmatpush1.bf16.msra.mxu1 %v212_v32  ;;  %v279_v32 = vunpack.c.h.s8.bf16 %v87_v20  ;;  %v233_v20 = vunpack.c.h.s8.bf16 %v65_v10 }
  0x27   :  { %558 = vmatpush1.bf16.msra.mxu0 %v308_v33  ;;  %516 = vmatprep.subr.bf16.mxu1 %v219_v34  ;;  %v375_v33 = vunpack.c.h.s8.bf16 %v135_v21  ;;  %v141_v34 = vld [vmem:[#allocation2 + $0x308] sm:$0xff] }
  0x28   :  { %559 = vmatprep.subr.bf16.mxu0 %v315_v35  ;;  %v47_v35 = vld [vmem:[#allocation2 + $0x18] sm:$0xff]  ;;  %v165_v21 = vld [vmem:[#allocation2 + $0x3c8] sm:$0xff] }
  0x29   :  { %v197_v48 = vunpack.c.h.s8.bf16 %v47_v35 }
  0x2a   :  { %517 = vmatpush1.bf16.msra.mxu1 %v218_v38  ;;  %v278_v38 = vunpack.c.h.s8.bf16 %v86_v22  ;;  %v71_v22 = vld [vmem:[#allocation2 + $0xd8] sm:$0xff] }
  0x2b   :  { %560 = vmatpush1.bf16.msra.mxu0 %v314_v39  ;;  %518 = vmatprep.subr.bf16.mxu1 %v225_v40  ;;  %v374_v39 = vunpack.c.h.s8.bf16 %v134_v23  ;;  %v381_v40 = vunpack.c.l.s8.bf16 %v141_v34 }
  0x2c   :  { %561 = vmatprep.subr.bf16.mxu0 %v321_v41  ;;  %v191_v41 = vunpack.c.l.s8.bf16 %v47_v35  ;;  %v171_v35 = vld [vmem:[#allocation2 + $0x3f8] sm:$0xff] }
  0x2e   :  { %519 = vmatpush1.bf16.msra.mxu1 %v224_v44  ;;  %v380_v44 = vunpack.c.l.s8.bf16 %v140_v36 }
  0x2f   :  { %562 = vmatpush1.bf16.msra.mxu0 %v320_v45  ;;  %520 = vmatprep.subr.bf16.mxu1 %v231_v46  ;;  %v190_v45 = vunpack.c.l.s8.bf16 %v46_v37  ;;  %v147_v46 = vld [vmem:[#allocation2 + $0x338] sm:$0xff] }
  0x30   :  { %563 = vmatprep.subr.bf16.mxu0 %v327_v47  ;;  %v387_v47 = vunpack.c.h.s8.bf16 %v141_v34  ;;  %v245_v34 = vunpack.c.h.s8.bf16 %v71_v22 }
  0x32   :  { %521 = vmatpush1.bf16.msra.mxu1 %v230_v50  ;;  %v1873_v50 = vld [vmem:[%s2095_s0 + $0x14] ss:$24 sps:$4 sm:$0xff]  }
  0x33   :  { %564 = vmatpush1.bf16.msra.mxu0 %v326_v51  ;;  %522 = vmatprep.subr.bf16.mxu1 %v237_v52  ;;  %v386_v51 = vunpack.c.h.s8.bf16 %v140_v36  ;;  %v196_v52 = vunpack.c.h.s8.bf16 %v46_v37  ;;  %v77_v36 = vld [vmem:[#allocation2 + $0x108] sm:$0xff] }
  0x34   :  { %565 = vmatprep.subr.bf16.mxu0 %v333_v53  ;;  %v393_v53 = vunpack.c.l.s8.bf16 %v147_v46 }
  0x36   :  { %523 = vmatpush1.bf16.msra.mxu1 %v236_v56  ;;  %v52_v56 = vld [vmem:[#allocation2 + $0x40] sm:$0xff] }
  0x37   :  { %566 = vmatpush1.bf16.msra.mxu0 %v332_v57  ;;  %524 = vmatprep.subr.bf16.mxu1 %v243_v58  ;;  %v392_v57 = vunpack.c.l.s8.bf16 %v146_v55  ;;  %v202_v58 = vunpack.c.l.s8.bf16 %v52_v56 }
  0x38   :  { %567 = vmatprep.subr.bf16.mxu0 %v339_v59  ;;  %v399_v59 = vunpack.c.h.s8.bf16 %v147_v46 }
  0x3a   :  { %525 = vmatpush1.bf16.msra.mxu1 %v242_v0  ;;  %v208_v0 = vunpack.c.h.s8.bf16 %v52_v56  ;;  %v176_v56 = vld [vmem:[#allocation2 + $0x420] sm:$0xff] }
  0x3b   :  { %568 = vmatpush1.bf16.msra.mxu0 %v338_v1  ;;  %526 = vmatprep.subr.bf16.mxu1 %v249_v2  ;;  %v405_v1 = vunpack.c.l.s8.bf16 %v153_v61  ;;  %v215_v2 = vunpack.c.l.s8.bf16 %v59_v62  ;;  %v183_v62 = vld [vmem:[#allocation2 + $0x458] sm:$0xff] }
  0x3c   :  { %569 = vmatprep.subr.bf16.mxu0 %v345_v3  ;;  %v152_v3 = vld [vmem:[#allocation2 + $0x360] sm:$0xff] }
  0x3d   :  { %v410_v11 = vunpack.c.h.s8.bf16 %v152_v3 }
  0x3e   :  { %527 = vmatpush1.bf16.msra.mxu1 %v248_v4  ;;  %v58_v4 = vld [vmem:[#allocation2 + $0x70] sm:$0xff] }
  0x3f   :  { %570 = vmatpush1.bf16.msra.mxu0 %v344_v5  ;;  %528 = vmatprep.subr.bf16.mxu1 %v255_v6  ;;  %v404_v5 = vunpack.c.l.s8.bf16 %v152_v3  ;;  %v214_v6 = vunpack.c.l.s8.bf16 %v58_v4 }
  0x40   :  { %571 = vmatprep.subr.bf16.mxu0 %v351_v7  ;;  %v411_v7 = vunpack.c.h.s8.bf16 %v153_v61 }
  0x42   :  { %529 = vmatpush1.bf16.msra.mxu1 %v254_v12  ;;  %v220_v12 = vunpack.c.h.s8.bf16 %v58_v4  ;;  %v182_v4 = vld [vmem:[#allocation2 + $0x450] sm:$0xff] }
  0x43   :  { %572 = vmatpush1.bf16.msra.mxu0 %v350_v13  ;;  %530 = vmatprep.subr.bf16.mxu1 %v261_v14  ;;  %v417_v13 = vunpack.c.l.s8.bf16 %v159_v9  ;;  %v227_v14 = vunpack.c.l.s8.bf16 %v65_v10  ;;  %v95_v10 = vld [vmem:[#allocation2 + $0x198] sm:$0xff] }
  0x44   :  { %573 = vmatprep.subr.bf16.mxu0 %v357_v15  ;;  %v158_v15 = vld [vmem:[#allocation2 + $0x390] sm:$0xff] }
  0x45   :  { %v422_v23 = vunpack.c.h.s8.bf16 %v158_v15 }
  0x46   :  { %531 = vmatpush1.bf16.msra.mxu1 %v260_v16  ;;  %v64_v16 = vld [vmem:[#allocation2 + $0xa0] sm:$0xff] }
  0x47   :  { %574 = vmatpush1.bf16.msra.mxu0 %v356_v17  ;;  %532 = vmatprep.subr.bf16.mxu1 %v267_v18  ;;  %v416_v17 = vunpack.c.l.s8.bf16 %v158_v15  ;;  %v226_v18 = vunpack.c.l.s8.bf16 %v64_v16 }
  0x48   :  { %575 = vmatprep.subr.bf16.mxu0 %v363_v19  ;;  %v423_v19 = vunpack.c.h.s8.bf16 %v159_v9 }
  0x4a   :  { %533 = vmatpush1.bf16.msra.mxu1 %v266_v25  ;;  %v232_v25 = vunpack.c.h.s8.bf16 %v64_v16  ;;  %v94_v16 = vld [vmem:[#allocation2 + $0x190] sm:$0xff] }
  0x4b   :  { %576 = vmatpush1.bf16.msra.mxu0 %v362_v26  ;;  %534 = vmatprep.subr.bf16.mxu1 %v273_v28  ;;  %v429_v26 = vunpack.c.l.s8.bf16 %v165_v21  ;;  %v239_v28 = vunpack.c.l.s8.bf16 %v71_v22 }
  0x4c   :  { %577 = vmatprep.subr.bf16.mxu0 %v369_v29  ;;  %v164_v29 = vld [vmem:[#allocation2 + $0x3c0] sm:$0xff] }
  0x4d   :  { %v434_v37 = vunpack.c.h.s8.bf16 %v164_v29 }
  0x4e   :  { %535 = vmatpush1.bf16.msra.mxu1 %v272_v30  ;;  %v70_v30 = vld [vmem:[#allocation2 + $0xd0] sm:$0xff] }
  0x4f   :  { %578 = vmatpush1.bf16.msra.mxu0 %v368_v31  ;;  %536 = vmatprep.subr.bf16.mxu1 %v279_v32  ;;  %v428_v31 = vunpack.c.l.s8.bf16 %v164_v29  ;;  %v238_v32 = vunpack.c.l.s8.bf16 %v70_v30 }
  0x50   :  { %579 = vmatprep.subr.bf16.mxu0 %v375_v33  ;;  %v435_v33 = vunpack.c.h.s8.bf16 %v165_v21  ;;  %v293_v21 = vunpack.c.h.s8.bf16 %v95_v10 }
  0x52   :  { %537 = vmatpush1.bf16.msra.mxu1 %v278_v38  ;;  %v244_v38 = vunpack.c.h.s8.bf16 %v70_v30 }
  0x53   :  { %580 = vmatpush1.bf16.msra.mxu0 %v374_v39  ;;  %635 = vmatprep.subr.bf16.mxu1 %v191_v41  ;;  %v441_v39 = vunpack.c.l.s8.bf16 %v171_v35  ;;  %v170_v41 = vld [vmem:[#allocation2 + $0x3f0] sm:$0xff] }
  0x54   :  { %592 = vmatprep.subr.bf16.mxu0 %v381_v40  ;;  %v251_v40 = vunpack.c.l.s8.bf16 %v77_v36 }
  0x55   :  { %539 = vmatmul.mubr.bf16.vlgmr.msra.gmra.mrb[0].mxu1 %v1863_v42 }
  0x56   :  { %582 = vmatmul.mubr.bf16.vlgmr.msra.gmra.mrb[0].mxu0 %v1868_v43  ;;  %636 = vmatpush1.bf16.msra.mxu1 %v190_v45  ;;  %v440_v45 = vunpack.c.l.s8.bf16 %v170_v41 }
  0x57   :  { %593 = vmatpush1.bf16.msra.mxu0 %v380_v44  ;;  %637 = vmatprep.subr.bf16.mxu1 %v197_v48  ;;  %v76_v44 = vld [vmem:[#allocation2 + $0x100] sm:$0xff]  ;;  %v257_v48 = vunpack.c.h.s8.bf16 %v77_v36 }
  0x58   :  { %594 = vmatprep.subr.bf16.mxu0 %v387_v47  ;;  %624 = vmatprep.mubr.bf16.mxu0 %v1873_v50  ;;  %v250_v46 = vunpack.c.l.s8.bf16 %v76_v44  ;;  %v447_v47 = vunpack.c.h.s8.bf16 %v171_v35 }
  0x59   :  { %667 = vmatprep.mubr.bf16.mxu1 %v1851_v24 }
  0x5a   :  { %638 = vmatpush1.bf16.msra.mxu1 %v196_v52  ;;  %v446_v52 = vunpack.c.h.s8.bf16 %v170_v41 }
  0x5b   :  { %595 = vmatpush1.bf16.msra.mxu0 %v386_v51  ;;  %639 = vmatprep.subr.bf16.mxu1 %v203_v54  ;;  %v83_v51 = vld [vmem:[#allocation2 + $0x138] sm:$0xff]  ;;  %v453_v54 = vunpack.c.l.s8.bf16 %v177_v49 }
  0x5c   :  { %596 = vmatprep.subr.bf16.mxu0 %v393_v53  ;;  %v256_v53 = vunpack.c.h.s8.bf16 %v76_v44  ;;  %v263_v55 = vunpack.c.l.s8.bf16 %v83_v51  ;;  %v269_v61 = vunpack.c.h.s8.bf16 %v83_v51  ;;  %v106_v44 = vld [vmem:[#allocation2 + $0x1f0] sm:$0xff]  ;;  %v67_v51 = vld [vmem:[#allocation2 + $0xb8] sm:$0xff] }
  0x5e   :  { %640 = vmatpush1.bf16.msra.mxu1 %v202_v58  ;;  %v452_v58 = vunpack.c.l.s8.bf16 %v176_v56 }
  0x5f   :  { %597 = vmatpush1.bf16.msra.mxu0 %v392_v57  ;;  %641 = vmatprep.subr.bf16.mxu1 %v209_v60  ;;  %v82_v57 = vld [vmem:[#allocation2 + $0x130] sm:$0xff]  ;;  %v459_v60 = vunpack.c.h.s8.bf16 %v177_v49  ;;  %v113_v49 = vld [vmem:[#allocation2 + $0x228] sm:$0xff] }
  0x60   :  { %598 = vmatprep.subr.bf16.mxu0 %v399_v59  ;;  %v262_v59 = vunpack.c.l.s8.bf16 %v82_v57 }
  0x62   :  { %642 = vmatpush1.bf16.msra.mxu1 %v208_v0  ;;  %v458_v0 = vunpack.c.h.s8.bf16 %v176_v56  ;;  %v112_v56 = vld [vmem:[#allocation2 + $0x220] sm:$0xff] }
  0x63   :  { %599 = vmatpush1.bf16.msra.mxu0 %v398_v63  ;;  %643 = vmatprep.subr.bf16.mxu1 %v215_v2  ;;  %v89_v63 = vld [vmem:[#allocation2 + $0x168] sm:$0xff]  ;;  %v465_v2 = vunpack.c.l.s8.bf16 %v183_v62 }
  0x64   :  { %600 = vmatprep.subr.bf16.mxu0 %v405_v1  ;;  %v268_v1 = vunpack.c.h.s8.bf16 %v82_v57  ;;  %v275_v3 = vunpack.c.l.s8.bf16 %v89_v63  ;;  %v281_v9 = vunpack.c.h.s8.bf16 %v89_v63  ;;  %v66_v57 = vld [vmem:[#allocation2 + $0xb0] sm:$0xff]  ;;  %v73_v63 = vld [vmem:[#allocation2 + $0xe8] sm:$0xff] }
  0x66   :  { %644 = vmatpush1.bf16.msra.mxu1 %v214_v6  ;;  %v464_v6 = vunpack.c.l.s8.bf16 %v182_v4 }
  0x67   :  { %601 = vmatpush1.bf16.msra.mxu0 %v404_v5  ;;  %645 = vmatprep.subr.bf16.mxu1 %v221_v8  ;;  %v88_v5 = vld [vmem:[#allocation2 + $0x160] sm:$0xff]  ;;  %v471_v8 = vunpack.c.h.s8.bf16 %v183_v62  ;;  %v119_v62 = vld [vmem:[#allocation2 + $0x258] sm:$0xff] }
  0x68   :  { %602 = vmatprep.subr.bf16.mxu0 %v411_v7  ;;  %v274_v7 = vunpack.c.l.s8.bf16 %v88_v5 }
  0x6a   :  { %646 = vmatpush1.bf16.msra.mxu1 %v220_v12  ;;  %v470_v12 = vunpack.c.h.s8.bf16 %v182_v4  ;;  %v118_v4 = vld [vmem:[#allocation2 + $0x250] sm:$0xff] }
  0x6b   :  { %603 = vmatpush1.bf16.msra.mxu0 %v410_v11  ;;  %647 = vmatprep.subr.bf16.mxu1 %v227_v14  ;;  %v49_v11 = vld [vmem:[#allocation2 + $0x28] sm:$0xff]  ;;  %v287_v14 = vunpack.c.l.s8.bf16 %v95_v10 }
  0x6c   :  { %604 = vmatprep.subr.bf16.mxu0 %v417_v13  ;;  %v280_v13 = vunpack.c.h.s8.bf16 %v88_v5  ;;  %v193_v15 = vunpack.c.l.s8.bf16 %v49_v11  ;;  %v199_v22 = vunpack.c.h.s8.bf16 %v49_v11  ;;  %v72_v5 = vld [vmem:[#allocation2 + $0xe0] sm:$0xff]  ;;  %v125_v10 = vld [vmem:[#allocation2 + $0x288] sm:$0xff]  ;;  %v79_v11 = vld [vmem:[#allocation2 + $0x118] sm:$0xff] }
  0x6e   :  { %648 = vmatpush1.bf16.msra.mxu1 %v226_v18  ;;  %v1882_v18 = vld [vmem:[%s2095_s0 + $0x10] ss:$24 sps:$4 sm:$0xff]  }
  0x6f   :  { %605 = vmatpush1.bf16.msra.mxu0 %v416_v17  ;;  %649 = vmatprep.subr.bf16.mxu1 %v233_v20  ;;  %v48_v17 = vld [vmem:[#allocation2 + $0x20] sm:$0xff] }
  0x70   :  { %606 = vmatprep.subr.bf16.mxu0 %v423_v19  ;;  %v286_v19 = vunpack.c.l.s8.bf16 %v94_v16  ;;  %v192_v20 = vunpack.c.l.s8.bf16 %v48_v17 }
  0x72   :  { %650 = vmatpush1.bf16.msra.mxu1 %v232_v25  ;;  %v55_v25 = vld [vmem:[#allocation2 + $0x58] sm:$0xff] }
  0x73   :  { %607 = vmatpush1.bf16.msra.mxu0 %v422_v23  ;;  %651 = vmatprep.subr.bf16.mxu1 %v239_v28  ;;  %v101_v23 = vld [vmem:[#allocation2 + $0x1c8] sm:$0xff]  ;;  %v198_v28 = vunpack.c.h.s8.bf16 %v48_v17  ;;  %v205_v30 = vunpack.c.l.s8.bf16 %v55_v25  ;;  %v211_v36 = vunpack.c.h.s8.bf16 %v55_v25  ;;  %v78_v17 = vld [vmem:[#allocation2 + $0x110] sm:$0xff] }
  0x74   :  { %608 = vmatprep.subr.bf16.mxu0 %v429_v26  ;;  %v292_v26 = vunpack.c.h.s8.bf16 %v94_v16  ;;  %v299_v29 = vunpack.c.l.s8.bf16 %v101_v23  ;;  %v305_v35 = vunpack.c.h.s8.bf16 %v101_v23  ;;  %v124_v16 = vld [vmem:[#allocation2 + $0x280] sm:$0xff]  ;;  %v131_v23 = vld [vmem:[#allocation2 + $0x2b8] sm:$0xff]  ;;  %v85_v25 = vld [vmem:[#allocation2 + $0x148] sm:$0xff] }
  0x76   :  { %652 = vmatpush1.bf16.msra.mxu1 %v238_v32  ;;  %v54_v32 = vld [vmem:[#allocation2 + $0x50] sm:$0xff] }
  0x77   :  { %609 = vmatpush1.bf16.msra.mxu0 %v428_v31  ;;  %653 = vmatprep.subr.bf16.mxu1 %v245_v34  ;;  %v100_v31 = vld [vmem:[#allocation2 + $0x1c0] sm:$0xff]  ;;  %v204_v34 = vunpack.c.l.s8.bf16 %v54_v32 }
  0x78   :  { %610 = vmatprep.subr.bf16.mxu0 %v435_v33  ;;  %v298_v33 = vunpack.c.l.s8.bf16 %v100_v31 }
  0x7a   :  { %654 = vmatpush1.bf16.msra.mxu1 %v244_v38  ;;  %v61_v38 = vld [vmem:[#allocation2 + $0x88] sm:$0xff] }
  0x7b   :  { %611 = vmatpush1.bf16.msra.mxu0 %v434_v37  ;;  %655 = vmatprep.subr.bf16.mxu1 %v251_v40  ;;  %v107_v37 = vld [vmem:[#allocation2 + $0x1f8] sm:$0xff]  ;;  %v210_v40 = vunpack.c.h.s8.bf16 %v54_v32  ;;  %v84_v32 = vld [vmem:[#allocation2 + $0x140] sm:$0xff] }
  0x7c   :  { %612 = vmatprep.subr.bf16.mxu0 %v441_v39  ;;  %v304_v39 = vunpack.c.h.s8.bf16 %v100_v31  ;;  %v311_v41 = vunpack.c.l.s8.bf16 %v107_v37  ;;  %v130_v31 = vld [vmem:[#allocation2 + $0x2b0] sm:$0xff] }
  0x7e   :  { %656 = vmatpush1.bf16.msra.mxu1 %v250_v46 }
  0x7f   :  { %613 = vmatpush1.bf16.msra.mxu0 %v440_v45  ;;  %657 = vmatprep.subr.bf16.mxu1 %v257_v48  ;;  %v310_v45 = vunpack.c.l.s8.bf16 %v106_v44  ;;  %v223_v48 = vunpack.c.h.s8.bf16 %v61_v38 }
  0x80   :  { %614 = vmatprep.subr.bf16.mxu0 %v447_v47  ;;  %v317_v47 = vunpack.c.h.s8.bf16 %v107_v37  ;;  %v137_v37 = vld [vmem:[#allocation2 + $0x2e8] sm:$0xff] }
  0x82   :  { %658 = vmatpush1.bf16.msra.mxu1 %v256_v53 }
  0x83   :  { %615 = vmatpush1.bf16.msra.mxu0 %v446_v52  ;;  %659 = vmatprep.subr.bf16.mxu1 %v263_v55  ;;  %v316_v52 = vunpack.c.h.s8.bf16 %v106_v44  ;;  %v229_v55 = vunpack.c.l.s8.bf16 %v67_v51  ;;  %v136_v44 = vld [vmem:[#allocation2 + $0x2e0] sm:$0xff] }
  0x84   :  { %616 = vmatprep.subr.bf16.mxu0 %v453_v54  ;;  %v323_v54 = vunpack.c.l.s8.bf16 %v113_v49 }
  0x86   :  { %660 = vmatpush1.bf16.msra.mxu1 %v262_v59  ;;  %v228_v59 = vunpack.c.l.s8.bf16 %v66_v57 }
  0x87   :  { %617 = vmatpush1.bf16.msra.mxu0 %v452_v58  ;;  %661 = vmatprep.subr.bf16.mxu1 %v269_v61  ;;  %v322_v58 = vunpack.c.l.s8.bf16 %v112_v56  ;;  %v235_v61 = vunpack.c.h.s8.bf16 %v67_v51  ;;  %v97_v51 = vld [vmem:[#allocation2 + $0x1a8] sm:$0xff] }
  0x88   :  { %618 = vmatprep.subr.bf16.mxu0 %v459_v60  ;;  %v329_v60 = vunpack.c.h.s8.bf16 %v113_v49  ;;  %v143_v49 = vld [vmem:[#allocation2 + $0x318] sm:$0xff] }
  0x8a   :  { %662 = vmatpush1.bf16.msra.mxu1 %v268_v1  ;;  %v234_v1 = vunpack.c.h.s8.bf16 %v66_v57  ;;  %v96_v57 = vld [vmem:[#allocation2 + $0x1a0] sm:$0xff] }
  0x8b   :  { %619 = vmatpush1.bf16.msra.mxu0 %v458_v0  ;;  %663 = vmatprep.subr.bf16.mxu1 %v275_v3  ;;  %v328_v0 = vunpack.c.h.s8.bf16 %v112_v56  ;;  %v241_v3 = vunpack.c.l.s8.bf16 %v73_v63  ;;  %v142_v56 = vld [vmem:[#allocation2 + $0x310] sm:$0xff] }
  0x8c   :  { %620 = vmatprep.subr.bf16.mxu0 %v465_v2  ;;  %v335_v2 = vunpack.c.l.s8.bf16 %v119_v62 }
  0x8e   :  { %664 = vmatpush1.bf16.msra.mxu1 %v274_v7  ;;  %v240_v7 = vunpack.c.l.s8.bf16 %v72_v5 }
  0x8f   :  { %621 = vmatpush1.bf16.msra.mxu0 %v464_v6  ;;  %665 = vmatprep.subr.bf16.mxu1 %v281_v9  ;;  %v334_v6 = vunpack.c.l.s8.bf16 %v118_v4  ;;  %v247_v9 = vunpack.c.h.s8.bf16 %v73_v63  ;;  %v103_v63 = vld [vmem:[#allocation2 + $0x1d8] sm:$0xff] }
  0x90   :  { %622 = vmatprep.subr.bf16.mxu0 %v471_v8  ;;  %v341_v8 = vunpack.c.h.s8.bf16 %v119_v62  ;;  %v149_v62 = vld [vmem:[#allocation2 + $0x348] sm:$0xff] }
  0x92   :  { %666 = vmatpush1.bf16.msra.mxu1 %v280_v13  ;;  %v246_v13 = vunpack.c.h.s8.bf16 %v72_v5  ;;  %v102_v5 = vld [vmem:[#allocation2 + $0x1d0] sm:$0xff] }
  0x93   :  { %623 = vmatpush1.bf16.msra.mxu0 %v470_v12  ;;  %678 = vmatprep.subr.bf16.mxu1 %v287_v14  ;;  %v340_v12 = vunpack.c.h.s8.bf16 %v118_v4  ;;  %v347_v14 = vunpack.c.l.s8.bf16 %v125_v10  ;;  %v148_v4 = vld [vmem:[#allocation2 + $0x340] sm:$0xff] }
  0x94   :  { %764 = vmatprep.subr.bf16.mxu0 %v193_v15  ;;  %v253_v15 = vunpack.c.l.s8.bf16 %v79_v11 }
  0x95   :  { %668 = vmatmul.mubr.bf16.vlgmr.msra.gmra.mrb[4].mxu1 %v1863_v42 }
  0x96   :  { %625 = vmatmul.mubr.bf16.vlgmr.msra.gmra.mrb[0].mxu0 %v1882_v18  ;;  %679 = vmatpush1.bf16.msra.mxu1 %v286_v19  ;;  %v346_v19 = vunpack.c.l.s8.bf16 %v124_v16 }
  0x97   :  { %765 = vmatpush1.bf16.msra.mxu0 %v192_v20  ;;  %680 = vmatprep.subr.bf16.mxu1 %v293_v21  ;;  %v252_v20 = vunpack.c.l.s8.bf16 %v78_v17  ;;  %v353_v21 = vunpack.c.h.s8.bf16 %v125_v10  ;;  %v109_v10 = vld [vmem:[#allocation2 + $0x208] sm:$0xff] }
  0x98   :  { %766 = vmatprep.subr.bf16.mxu0 %v199_v22  ;;  %710 = vmatprep.mubr.bf16.mxu1 %v1856_v27  ;;  %v217_v27 = vunpack.c.l.s8.bf16 %v61_v38  ;;  %v259_v22 = vunpack.c.h.s8.bf16 %v79_v11  ;;  %v91_v38 = vld [vmem:[#allocation2 + $0x178] sm:$0xff]  ;;  %v400_v11 = vunpack.c.h.s8.bf16 %v148_v4 }
  0x99   :  { %796 = vmatprep.mubr.bf16.mxu0 %v1851_v24  ;;  %v60_v24 = vld [vmem:[#allocation2 + $0x80] sm:$0xff] }
  0x9a   :  { %681 = vmatpush1.bf16.msra.mxu1 %v292_v26  ;;  %v216_v46 = vunpack.c.l.s8.bf16 %v60_v24  ;;  %v222_v53 = vunpack.c.h.s8.bf16 %v60_v24  ;;  %v352_v26 = vunpack.c.h.s8.bf16 %v124_v16  ;;  %v90_v24 = vld [vmem:[#allocation2 + $0x170] sm:$0xff]  ;;  %v108_v16 = vld [vmem:[#allocation2 + $0x200] sm:$0xff] }
  0x9b   :  { %767 = vmatpush1.bf16.msra.mxu0 %v198_v28  ;;  %682 = vmatprep.subr.bf16.mxu1 %v299_v29  ;;  %v258_v28 = vunpack.c.h.s8.bf16 %v78_v17  ;;  %v359_v29 = vunpack.c.l.s8.bf16 %v131_v23 }
  0x9c   :  { %768 = vmatprep.subr.bf16.mxu0 %v205_v30  ;;  %v265_v30 = vunpack.c.l.s8.bf16 %v85_v25 }
  0x9e   :  { %683 = vmatpush1.bf16.msra.mxu1 %v298_v33  ;;  %v358_v33 = vunpack.c.l.s8.bf16 %v130_v31 }
  0x9f   :  { %769 = vmatpush1.bf16.msra.mxu0 %v204_v34  ;;  %684 = vmatprep.subr.bf16.mxu1 %v305_v35  ;;  %v264_v34 = vunpack.c.l.s8.bf16 %v84_v32  ;;  %v365_v35 = vunpack.c.h.s8.bf16 %v131_v23  ;;  %v115_v23 = vld [vmem:[#allocation2 + $0x238] sm:$0xff] }
  0xa0   :  { %770 = vmatprep.subr.bf16.mxu0 %v211_v36  ;;  %v271_v36 = vunpack.c.h.s8.bf16 %v85_v25 }
  0xa2   :  { %685 = vmatpush1.bf16.msra.mxu1 %v304_v39  ;;  %v364_v39 = vunpack.c.h.s8.bf16 %v130_v31  ;;  %v114_v31 = vld [vmem:[#allocation2 + $0x230] sm:$0xff] }
  0xa3   :  { %771 = vmatpush1.bf16.msra.mxu0 %v210_v40  ;;  %686 = vmatprep.subr.bf16.mxu1 %v311_v41  ;;  %v270_v40 = vunpack.c.h.s8.bf16 %v84_v32  ;;  %v371_v41 = vunpack.c.l.s8.bf16 %v137_v37 }
  0xa4   :  { %772 = vmatprep.subr.bf16.mxu0 %v217_v27  ;;  %v277_v27 = vunpack.c.l.s8.bf16 %v91_v38 }
  0xa6   :  { %687 = vmatpush1.bf16.msra.mxu1 %v310_v45  ;;  %v370_v45 = vunpack.c.l.s8.bf16 %v136_v44 }
  0xa7   :  { %773 = vmatpush1.bf16.msra.mxu0 %v216_v46  ;;  %688 = vmatprep.subr.bf16.mxu1 %v317_v47  ;;  %v276_v46 = vunpack.c.l.s8.bf16 %v90_v24  ;;  %v377_v47 = vunpack.c.h.s8.bf16 %v137_v37  ;;  %v121_v37 = vld [vmem:[#allocation2 + $0x268] sm:$0xff] }
  0xa8   :  { %774 = vmatprep.subr.bf16.mxu0 %v223_v48  ;;  %v283_v48 = vunpack.c.h.s8.bf16 %v91_v38 }
  0xaa   :  { %689 = vmatpush1.bf16.msra.mxu1 %v316_v52  ;;  %v376_v52 = vunpack.c.h.s8.bf16 %v136_v44  ;;  %v120_v44 = vld [vmem:[#allocation2 + $0x260] sm:$0xff] }
  0xab   :  { %775 = vmatpush1.bf16.msra.mxu0 %v222_v53  ;;  %690 = vmatprep.subr.bf16.mxu1 %v323_v54  ;;  %v282_v53 = vunpack.c.h.s8.bf16 %v90_v24  ;;  %v383_v54 = vunpack.c.l.s8.bf16 %v143_v49 }
  0xac   :  { %776 = vmatprep.subr.bf16.mxu0 %v229_v55  ;;  %v289_v55 = vunpack.c.l.s8.bf16 %v97_v51 }
  0xae   :  { %691 = vmatpush1.bf16.msra.mxu1 %v322_v58  ;;  %v382_v58 = vunpack.c.l.s8.bf16 %v142_v56 }
  0xaf   :  { %777 = vmatpush1.bf16.msra.mxu0 %v228_v59  ;;  %692 = vmatprep.subr.bf16.mxu1 %v329_v60  ;;  %v288_v59 = vunpack.c.l.s8.bf16 %v96_v57  ;;  %v389_v60 = vunpack.c.h.s8.bf16 %v143_v49  ;;  %v127_v49 = vld [vmem:[#allocation2 + $0x298] sm:$0xff] }
  0xb0   :  { %778 = vmatprep.subr.bf16.mxu0 %v235_v61  ;;  %v295_v61 = vunpack.c.h.s8.bf16 %v97_v51 }
  0xb2   :  { %693 = vmatpush1.bf16.msra.mxu1 %v328_v0  ;;  %v388_v0 = vunpack.c.h.s8.bf16 %v142_v56  ;;  %v126_v56 = vld [vmem:[#allocation2 + $0x290] sm:$0xff] }
  0xb3   :  { %779 = vmatpush1.bf16.msra.mxu0 %v234_v1  ;;  %694 = vmatprep.subr.bf16.mxu1 %v335_v2  ;;  %v294_v1 = vunpack.c.h.s8.bf16 %v96_v57  ;;  %v395_v2 = vunpack.c.l.s8.bf16 %v149_v62 }
  0xb4   :  { %780 = vmatprep.subr.bf16.mxu0 %v241_v3  ;;  %v301_v3 = vunpack.c.l.s8.bf16 %v103_v63 }
  0xb6   :  { %695 = vmatpush1.bf16.msra.mxu1 %v334_v6  ;;  %v1772_v6 = vld [vmem:[%s2095_s0 + $0xc] ss:$24 sps:$4 sm:$0xff]  }
  0xb7   :  { %781 = vmatpush1.bf16.msra.mxu0 %v240_v7  ;;  %696 = vmatprep.subr.bf16.mxu1 %v341_v8  ;;  %v401_v7 = vunpack.c.h.s8.bf16 %v149_v62  ;;  %v307_v8 = vunpack.c.h.s8.bf16 %v103_v63  ;;  %v133_v62 = vld [vmem:[#allocation2 + $0x2c8] sm:$0xff] }
  0xb8   :  { %782 = vmatprep.subr.bf16.mxu0 %v247_v9  ;;  %v155_v9 = vld [vmem:[#allocation2 + $0x378] sm:$0xff] }
  0xba   :  { %697 = vmatpush1.bf16.msra.mxu1 %v340_v12  ;;  %v306_v12 = vunpack.c.h.s8.bf16 %v102_v5 }
  0xbb   :  { %783 = vmatpush1.bf16.msra.mxu0 %v246_v13  ;;  %698 = vmatprep.subr.bf16.mxu1 %v347_v14  ;;  %v407_v13 = vunpack.c.l.s8.bf16 %v155_v9  ;;  %v313_v14 = vunpack.c.l.s8.bf16 %v109_v10 }
  0xbc   :  { %784 = vmatprep.subr.bf16.mxu0 %v253_v15  ;;  %v154_v15 = vld [vmem:[#allocation2 + $0x370] sm:$0xff] }
  0xbd   :  { %v406_v17 = vunpack.c.l.s8.bf16 %v154_v15  ;;  %v412_v25 = vunpack.c.h.s8.bf16 %v154_v15 }
  0xbe   :  { %699 = vmatpush1.bf16.msra.mxu1 %v346_v19  ;;  %v312_v19 = vunpack.c.l.s8.bf16 %v108_v16 }
  0xbf   :  { %785 = vmatpush1.bf16.msra.mxu0 %v252_v20  ;;  %700 = vmatprep.subr.bf16.mxu1 %v353_v21  ;;  %v413_v20 = vunpack.c.h.s8.bf16 %v155_v9  ;;  %v319_v21 = vunpack.c.h.s8.bf16 %v109_v10 }
  0xc0   :  { %786 = vmatprep.subr.bf16.mxu0 %v259_v22  ;;  %v161_v22 = vld [vmem:[#allocation2 + $0x3a8] sm:$0xff] }
  0xc2   :  { %701 = vmatpush1.bf16.msra.mxu1 %v352_v26  ;;  %v318_v26 = vunpack.c.h.s8.bf16 %v108_v16 }
  0xc3   :  { %787 = vmatpush1.bf16.msra.mxu0 %v258_v28  ;;  %702 = vmatprep.subr.bf16.mxu1 %v359_v29  ;;  %v419_v28 = vunpack.c.l.s8.bf16 %v161_v22  ;;  %v325_v29 = vunpack.c.l.s8.bf16 %v115_v23 }
  0xc4   :  { %788 = vmatprep.subr.bf16.mxu0 %v265_v30  ;;  %v160_v30 = vld [vmem:[#allocation2 + $0x3a0] sm:$0xff] }
  0xc5   :  { %v418_v32 = vunpack.c.l.s8.bf16 %v160_v30  ;;  %v424_v38 = vunpack.c.h.s8.bf16 %v160_v30  ;;  %v1693_v30 = vld [vmem:[%s2099_s4] sm:$0xff]  }
  0xc6   :  { %703 = vmatpush1.bf16.msra.mxu1 %v358_v33  ;;  %v324_v33 = vunpack.c.l.s8.bf16 %v114_v31 }
  0xc7   :  { %789 = vmatpush1.bf16.msra.mxu0 %v264_v34  ;;  %704 = vmatprep.subr.bf16.mxu1 %v365_v35  ;;  %v425_v34 = vunpack.c.h.s8.bf16 %v161_v22  ;;  %v331_v35 = vunpack.c.h.s8.bf16 %v115_v23 }
  0xc8   :  { %790 = vmatprep.subr.bf16.mxu0 %v271_v36  ;;  %v167_v36 = vld [vmem:[#allocation2 + $0x3d8] sm:$0xff] }
  0xca   :  { %705 = vmatpush1.bf16.msra.mxu1 %v364_v39  ;;  %v330_v39 = vunpack.c.h.s8.bf16 %v114_v31  ;;  %v151_v31 = vld [vmem:[#allocation2 + $0x358] sm:$0xff] }
  0xcb   :  { %791 = vmatpush1.bf16.msra.mxu0 %v270_v40  ;;  %706 = vmatprep.subr.bf16.mxu1 %v371_v41  ;;  %v431_v40 = vunpack.c.l.s8.bf16 %v167_v36  ;;  %v337_v41 = vunpack.c.l.s8.bf16 %v121_v37 }
  0xcc   :  { %792 = vmatprep.subr.bf16.mxu0 %v277_v27  ;;  %v166_v27 = vld [vmem:[#allocation2 + $0x3d0] sm:$0xff] }
  0xcd   :  { %v430_v24 = vunpack.c.l.s8.bf16 %v166_v27  ;;  %v436_v51 = vunpack.c.h.s8.bf16 %v166_v27  ;;  %v1698_v27 = vld [vmem:[%s2099_s4 + $0x58] sm:$0xff]  }
  0xce   :  { %707 = vmatpush1.bf16.msra.mxu1 %v370_v45  ;;  %v336_v45 = vunpack.c.l.s8.bf16 %v120_v44 }
  0xcf   :  { %793 = vmatpush1.bf16.msra.mxu0 %v276_v46  ;;  %708 = vmatprep.subr.bf16.mxu1 %v377_v47  ;;  %v437_v46 = vunpack.c.h.s8.bf16 %v167_v36  ;;  %v343_v47 = vunpack.c.h.s8.bf16 %v121_v37  ;;  %v150_v36 = vld [vmem:[#allocation2 + $0x350] sm:$0xff]  ;;  %v1695_v37 = vld [vmem:[%s2099_s4 + $0x8] sm:$0xff]  }
  0xd0   :  { %794 = vmatprep.subr.bf16.mxu0 %v283_v48  ;;  %v173_v48 = vld [vmem:[#allocation2 + $0x408] sm:$0xff] }
  0xd2   :  { %709 = vmatpush1.bf16.msra.mxu1 %v376_v52  ;;  %v342_v52 = vunpack.c.h.s8.bf16 %v120_v44  ;;  %v402_v44 = vunpack.c.h.s8.bf16 %v150_v36 }
  0xd3   :  { %795 = vmatpush1.bf16.msra.mxu0 %v282_v53  ;;  %721 = vmatprep.subr.bf16.mxu1 %v383_v54  ;;  %v443_v53 = vunpack.c.l.s8.bf16 %v173_v48  ;;  %v349_v54 = vunpack.c.l.s8.bf16 %v127_v49 }
  0xd4   :  { %807 = vmatprep.subr.bf16.mxu0 %v289_v55  ;;  %v172_v55 = vld [vmem:[#allocation2 + $0x400] sm:$0xff] }
  0xd5   :  { %711 = vmatmul.mubr.bf16.vlgmr.msra.gmra.mrb[4].mxu1 %v1868_v43  ;;  %v300_v43 = vunpack.c.l.s8.bf16 %v102_v5  ;;  %v442_v57 = vunpack.c.l.s8.bf16 %v172_v55  ;;  %v448_v63 = vunpack.c.h.s8.bf16 %v172_v55 }
  0xd6   :  { %797 = vmatmul.mubr.bf16.vlgmr.msra.gmra.mrb[4].mxu0 %v1863_v42  ;;  %722 = vmatpush1.bf16.msra.mxu1 %v382_v58  ;;  %v394_v42 = vunpack.c.l.s8.bf16 %v148_v4  ;;  %v348_v58 = vunpack.c.l.s8.bf16 %v126_v56  ;;  %v132_v4 = vld [vmem:[#allocation2 + $0x2c0] sm:$0xff] }
  0xd7   :  { %808 = vmatpush1.bf16.msra.mxu0 %v288_v59  ;;  %723 = vmatprep.subr.bf16.mxu1 %v389_v60  ;;  %v449_v59 = vunpack.c.h.s8.bf16 %v173_v48  ;;  %v355_v60 = vunpack.c.h.s8.bf16 %v127_v49  ;;  %v366_v10 = vunpack.c.h.s8.bf16 %v132_v4 }
  0xd8   :  { %809 = vmatprep.subr.bf16.mxu0 %v295_v61  ;;  %753 = vmatprep.mubr.bf16.mxu1 %v1873_v50  ;;  %v179_v61 = vld [vmem:[#allocation2 + $0x438] sm:$0xff] }
  0xd9   :  { %839 = vmatprep.mubr.bf16.mxu0 %v1772_v6  ;;  %v360_v6 = vunpack.c.l.s8.bf16 %v132_v4 }
  0xda   :  { %724 = vmatpush1.bf16.msra.mxu1 %v388_v0  ;;  %v354_v0 = vunpack.c.h.s8.bf16 %v126_v56  ;;  %v162_v56 = vld [vmem:[#allocation2 + $0x3b0] sm:$0xff] }
  0xdb   :  { %810 = vmatpush1.bf16.msra.mxu0 %v294_v1  ;;  %725 = vmatprep.subr.bf16.mxu1 %v395_v2  ;;  %v455_v1 = vunpack.c.l.s8.bf16 %v179_v61  ;;  %v361_v2 = vunpack.c.l.s8.bf16 %v133_v62  ;;  %v426_v4 = vunpack.c.h.s8.bf16 %v162_v56 }
  0xdc   :  { %811 = vmatprep.subr.bf16.mxu0 %v301_v3  ;;  %v178_v3 = vld [vmem:[#allocation2 + $0x430] sm:$0xff] }
  0xdd   :  { %v454_v5 = vunpack.c.l.s8.bf16 %v178_v3  ;;  %v460_v9 = vunpack.c.h.s8.bf16 %v178_v3  ;;  %v1706_v3 = vld [vmem:[%s2099_s4 + $0x78] sm:$0xff]  }
  0xde   :  { %726 = vmatpush1.bf16.msra.mxu1 %v394_v42  ;;  %v461_v42 = vunpack.c.h.s8.bf16 %v179_v61  ;;  %v420_v61 = vunpack.c.l.s8.bf16 %v162_v56 }
  0xdf   :  { %812 = vmatpush1.bf16.msra.mxu0 %v300_v43  ;;  %727 = vmatprep.subr.bf16.mxu1 %v401_v7  ;;  %v367_v43 = vunpack.c.h.s8.bf16 %v133_v62  ;;  %v185_v7 = vld [vmem:[#allocation2 + $0x468] sm:$0xff] }
  0xe0   :  { %813 = vmatprep.subr.bf16.mxu0 %v307_v8  ;;  %v139_v8 = vld [vmem:[#allocation2 + $0x2f8] sm:$0xff] }
  0xe2   :  { %728 = vmatpush1.bf16.msra.mxu1 %v400_v11  ;;  %v467_v11 = vunpack.c.l.s8.bf16 %v185_v7 }
  0xe3   :  { %814 = vmatpush1.bf16.msra.mxu0 %v306_v12  ;;  %729 = vmatprep.subr.bf16.mxu1 %v407_v13  ;;  %v373_v12 = vunpack.c.l.s8.bf16 %v139_v8  ;;  %v184_v13 = vld [vmem:[#allocation2 + $0x460] sm:$0xff] }
  0xe4   :  { %815 = vmatprep.subr.bf16.mxu0 %v313_v14  ;;  %v138_v14 = vld [vmem:[#allocation2 + $0x2f0] sm:$0xff]  ;;  %v466_v15 = vunpack.c.l.s8.bf16 %v184_v13 }
  0xe5   :  { %v372_v16 = vunpack.c.l.s8.bf16 %v138_v14  ;;  %v378_v22 = vunpack.c.h.s8.bf16 %v138_v14 }
  0xe6   :  { %730 = vmatpush1.bf16.msra.mxu1 %v406_v17  ;;  %v473_v17 = vunpack.c.h.s8.bf16 %v185_v7 }
  0xe7   :  { %816 = vmatpush1.bf16.msra.mxu0 %v312_v19  ;;  %731 = vmatprep.subr.bf16.mxu1 %v413_v20  ;;  %v379_v19 = vunpack.c.h.s8.bf16 %v139_v8  ;;  %v145_v20 = vld [vmem:[#allocation2 + $0x328] sm:$0xff] }
  0xe8   :  { %817 = vmatprep.subr.bf16.mxu0 %v319_v21  ;;  %v472_v21 = vunpack.c.h.s8.bf16 %v184_v13  ;;  %v385_v23 = vunpack.c.l.s8.bf16 %v145_v20 }
  0xea   :  { %732 = vmatpush1.bf16.msra.mxu1 %v412_v25  ;;  %v144_v25 = vld [vmem:[#allocation2 + $0x320] sm:$0xff] }
  0xeb   :  { %818 = vmatpush1.bf16.msra.mxu0 %v318_v26  ;;  %733 = vmatprep.subr.bf16.mxu1 %v419_v28  ;;  %v1692_v26 = vld [vmem:[%s2099_s4 + $0x40] sm:$0xff]   ;;  %v384_v28 = vunpack.c.l.s8.bf16 %v144_v25 }
  0xec   :  { %819 = vmatprep.subr.bf16.mxu0 %v325_v29  ;;  %v391_v29 = vunpack.c.h.s8.bf16 %v145_v20 }
  0xee   :  { %734 = vmatpush1.bf16.msra.mxu1 %v418_v32  ;;  %v1694_v32 = vld [vmem:[%s2099_s4 + $0x48] sm:$0xff]  }
  0xef   :  { %820 = vmatpush1.bf16.msra.mxu0 %v324_v33  ;;  %735 = vmatprep.subr.bf16.mxu1 %v425_v34  ;;  %v1773_v33 = vld [vmem:[%s2095_s0 + $0x8] ss:$24 sps:$4 sm:$0xff]   ;;  %v390_v34 = vunpack.c.h.s8.bf16 %v144_v25 }
  0xf0   :  { %821 = vmatprep.subr.bf16.mxu0 %v331_v35  ;;  %v397_v35 = vunpack.c.l.s8.bf16 %v151_v31 }
  0xf2   :  { %736 = vmatpush1.bf16.msra.mxu1 %v424_v38  ;;  %v1696_v38 = vld [vmem:[%s2099_s4 + $0x50] sm:$0xff]  }
  0xf3   :  { %822 = vmatpush1.bf16.msra.mxu0 %v330_v39  ;;  %737 = vmatprep.subr.bf16.mxu1 %v431_v40  ;;  %v396_v39 = vunpack.c.l.s8.bf16 %v150_v36  ;;  %v403_v40 = vunpack.c.h.s8.bf16 %v151_v31  ;;  %v895_v31 = vlaneseq  ;;  %v1971_v36 = vld [vmem:[%s2098_s3] sm:$0x3f] }
  0xf4   :  { %823 = vmatprep.subr.bf16.mxu0 %v337_v41  ;;  %v157_v41 = vld [vmem:[#allocation2 + $0x388] sm:$0xff] }
  0xf5   :  { %v415_v49 = vunpack.c.h.s8.bf16 %v157_v41 }
  0xf6   :  { %738 = vmatpush1.bf16.msra.mxu1 %v430_v24  ;;  %v409_v24 = vunpack.c.l.s8.bf16 %v157_v41 }
  0xf7   :  { %824 = vmatpush1.bf16.msra.mxu0 %v336_v45  ;;  %739 = vmatprep.subr.bf16.mxu1 %v437_v46  ;;  %v156_v45 = vld [vmem:[#allocation2 + $0x380] sm:$0xff]  ;;  %v1699_v46 = vld [vmem:[%s2099_s4 + $0x18] sm:$0xff]  }
  0xf8   :  { %825 = vmatprep.subr.bf16.mxu0 %v343_v47  ;;  %v1700_v47 = vld [vmem:[%s2099_s4 + $0x60] sm:$0xff]   ;;  %v408_v48 = vunpack.c.l.s8.bf16 %v156_v45 }
  0xfa   :  { %740 = vmatpush1.bf16.msra.mxu1 %v436_v51  ;;  %v1701_v51 = vld [vmem:[%s2099_s4 + $0x20] sm:$0xff]  }
  0xfb   :  { %826 = vmatpush1.bf16.msra.mxu0 %v342_v52  ;;  %741 = vmatprep.subr.bf16.mxu1 %v443_v53  ;;  %v163_v52 = vld [vmem:[#allocation2 + $0x3b8] sm:$0xff]  ;;  %v1702_v53 = vld [vmem:[%s2099_s4 + $0x68] sm:$0xff]  }
  0xfc   :  { %827 = vmatprep.subr.bf16.mxu0 %v349_v54  ;;  %v414_v54 = vunpack.c.h.s8.bf16 %v156_v45  ;;  %v421_v55 = vunpack.c.l.s8.bf16 %v163_v52 }
  0xfe   :  { %742 = vmatpush1.bf16.msra.mxu1 %v442_v57  ;;  %v1703_v57 = vld [vmem:[%s2099_s4 + $0x28] sm:$0xff]  }
  0xff   :  { %828 = vmatpush1.bf16.msra.mxu0 %v348_v58  ;;  %743 = vmatprep.subr.bf16.mxu1 %v449_v59  ;;  %v1704_v59 = vld [vmem:[%s2099_s4 + $0x70] sm:$0xff]  }
 0x100   :  { %829 = vmatprep.subr.bf16.mxu0 %v355_v60 }
 0x102   :  { %744 = vmatpush1.bf16.msra.mxu1 %v448_v63  ;;  %v427_v63 = vunpack.c.h.s8.bf16 %v163_v52 }
 0x103   :  { %830 = vmatpush1.bf16.msra.mxu0 %v354_v0  ;;  %745 = vmatprep.subr.bf16.mxu1 %v455_v1  ;;  %v1705_v1 = vld [vmem:[%s2099_s4 + $0x30] sm:$0xff]  }
 0x104   :  { %831 = vmatprep.subr.bf16.mxu0 %v361_v2  ;;  %v169_v2 = vld [vmem:[#allocation2 + $0x3e8] sm:$0xff] }
 0x105   :  { %v439_v8 = vunpack.c.h.s8.bf16 %v169_v2 }
 0x106   :  { %746 = vmatpush1.bf16.msra.mxu1 %v454_v5  ;;  %v433_v5 = vunpack.c.l.s8.bf16 %v169_v2  ;;  %v1713_v2 = vld [vmem:[%s2099_s4 + $0x90] sm:$0xff]  }
 0x107   :  { %832 = vmatpush1.bf16.msra.mxu0 %v360_v6  ;;  %747 = vmatprep.subr.bf16.mxu1 %v461_v42  ;;  %v168_v6 = vld [vmem:[#allocation2 + $0x3e0] sm:$0xff]  ;;  %v1707_v42 = vld [vmem:[%s2099_s4 + $0x38] sm:$0xff]  }
 0x108   :  { %833 = vmatprep.subr.bf16.mxu0 %v367_v43  ;;  %v1708_v43 = vld [vmem:[%s2099_s4 + $0xc0] sm:$0xff]   ;;  %v432_v7 = vunpack.c.l.s8.bf16 %v168_v6 }
 0x10a   :  { %748 = vmatpush1.bf16.msra.mxu1 %v460_v9  ;;  %v175_v9 = vld [vmem:[#allocation2 + $0x418] sm:$0xff] }
 0x10b   :  { %834 = vmatpush1.bf16.msra.mxu0 %v366_v10  ;;  %749 = vmatprep.subr.bf16.mxu1 %v467_v11  ;;  %v438_v10 = vunpack.c.h.s8.bf16 %v168_v6  ;;  %v445_v11 = vunpack.c.l.s8.bf16 %v175_v9  ;;  %v451_v14 = vunpack.c.h.s8.bf16 %v175_v9  ;;  %v1717_v6 = vld [vmem:[%s2099_s4 + $0xa0] sm:$0xff]   ;;  %v1722_v9 = vld [vmem:[%s2099_s4 + $0xf8] sm:$0xff]  }
 0x10c   :  { %835 = vmatprep.subr.bf16.mxu0 %v373_v12  ;;  %v174_v12 = vld [vmem:[#allocation2 + $0x410] sm:$0xff] }
 0x10d   :  { %v444_v13 = vunpack.c.l.s8.bf16 %v174_v12 }
 0x10e   :  { %750 = vmatpush1.bf16.msra.mxu1 %v466_v15  ;;  %v181_v15 = vld [vmem:[#allocation2 + $0x448] sm:$0xff] }
 0x10f   :  { %836 = vmatpush1.bf16.msra.mxu0 %v372_v16  ;;  %751 = vmatprep.subr.bf16.mxu1 %v473_v17  ;;  %v450_v16 = vunpack.c.h.s8.bf16 %v174_v12  ;;  %v457_v17 = vunpack.c.l.s8.bf16 %v181_v15 }
 0x110   :  { %837 = vmatprep.subr.bf16.mxu0 %v379_v19  ;;  %v180_v19 = vld [vmem:[#allocation2 + $0x440] sm:$0xff] }
 0x111   :  { %v456_v20 = vunpack.c.l.s8.bf16 %v180_v19 }
 0x112   :  { %752 = vmatpush1.bf16.msra.mxu1 %v472_v21  ;;  %v463_v21 = vunpack.c.h.s8.bf16 %v181_v15 }
 0x113   :  { %838 = vmatpush1.bf16.msra.mxu0 %v378_v22  ;;  %1590 = vmatprep.subr.bf16.mxu1 %v1692_v26  ;;  %v187_v22 = vld [vmem:[#allocation2 + $0x478] sm:$0xff]  ;;  %v186_v26 = vld [vmem:[#allocation2 + $0x470] sm:$0xff] }
 0x114   :  { %850 = vmatprep.subr.bf16.mxu0 %v385_v23  ;;  %v462_v23 = vunpack.c.h.s8.bf16 %v180_v19  ;;  %v469_v25 = vunpack.c.l.s8.bf16 %v187_v22 }
 0x115   :  { %754 = vmatmul.mubr.bf16.vlgmr.msra.gmra.mrb[4].mxu1 %v1882_v18 }
 0x116   :  { %840 = vmatmul.mubr.bf16.vlgmr.msra.gmra.mrb[4].mxu0 %v1773_v33  ;;  %1591 = vmatpush3.bf16.msra.mxu1 %v1693_v30  ;;  %v474_v30 = vunpack.c.h.s8.bf16 %v186_v26 }
 0x117   :  { %851 = vmatpush1.bf16.msra.mxu0 %v384_v28  ;;  %882 = vmatprep.mubr.bf16.mxu0 %v1873_v50  ;;  %v1697_v50 = vld [vmem:[%s2099_s4 + $0x10] sm:$0xff]   ;;  %v468_v28 = vunpack.c.l.s8.bf16 %v186_v26 }
 0x118   :  { %852 = vmatprep.subr.bf16.mxu0 %v391_v29  ;;  %1592 = vmatprep.subr.bf16.mxu1 %v1694_v32  ;;  %v475_v29 = vunpack.c.h.s8.bf16 %v187_v22  ;;  %v1959_v32 = vshrl.u32 %v895_v31, 7 }
 0x11a   :  { %1593 = vmatpush3.bf16.msra.mxu1 %v1695_v37  ;;  %v897_v33 = vsub.s32 0, %v1959_v32  ;;  %v905_v12 = vsub.s32 2, %v1959_v32 }
 0x11b   :  { %853 = vmatpush1.bf16.msra.mxu0 %v390_v34  ;;  %1594 = vmatprep.subr.bf16.mxu1 %v1696_v38  ;;  %v1965_v34 = vld [vmem:[%s2097_s2] sm:$0x3f] }
 0x11c   :  { %854 = vmatprep.subr.bf16.mxu0 %v397_v35  ;;  %v901_v35 = vsub.s32 1, %v1959_v32  ;;  %v898_v37 = vrot.slane %v1965_v34, %v897_v33 }
 0x11e   :  { %1595 = vmatpush3.bf16.msra.mxu1 %v1697_v50  ;;  %v902_v38 = vrot.slane %v1965_v34, %v901_v35 }
 0x11f   :  { %855 = vmatpush1.bf16.msra.mxu0 %v396_v39  ;;  %1596 = vmatprep.subr.bf16.mxu1 %v1698_v27  ;;  %v946_v27 = vrot.slane %v1971_v36, %v901_v35 }
 0x120   :  { %856 = vmatprep.subr.bf16.mxu0 %v403_v40  ;;  %v942_v40 = vrot.slane %v1971_v36, %v897_v33 }
 0x122   :  { %1597 = vmatpush3.bf16.msra.mxu1 %v1699_v46 }
 0x123   :  { %857 = vmatpush1.bf16.msra.mxu0 %v402_v44  ;;  %1598 = vmatprep.subr.bf16.mxu1 %v1700_v47 }
 0x124   :  { %858 = vmatprep.subr.bf16.mxu0 %v409_v24 }
 0x126   :  { %1599 = vmatpush3.bf16.msra.mxu1 %v1701_v51 }
 0x127   :  { %859 = vmatpush1.bf16.msra.mxu0 %v408_v48  ;;  %1600 = vmatprep.subr.bf16.mxu1 %v1702_v53 }
 0x128   :  { %860 = vmatprep.subr.bf16.mxu0 %v415_v49  ;;  %v1935_v58 = vpop.f32.mrb[0].mxu1 }
 0x129   :  { %v1940_v60 = vpop.f32.mrb[1].mxu1 }
 0x12a   :  { %v1942_v62 = vpop.f32.mrb[2].mxu1  ;;  %1601 = vmatpush3.bf16.msra.mxu1 %v1703_v57 }
 0x12b   :  { %861 = vmatpush1.bf16.msra.mxu0 %v414_v54  ;;  %v1944_v0 = vpop.f32.mrb[3].mxu1  ;;  %1602 = vmatprep.subr.bf16.mxu1 %v1704_v59 }
 0x12c   :  { %862 = vmatprep.subr.bf16.mxu0 %v421_v55 }
 0x12e   :  { %1603 = vmatpush3.bf16.msra.mxu1 %v1705_v1  ;;  %v1712_v1 = vld [vmem:[%s2099_s4 + $0xd0] sm:$0xff]  }
 0x12f   :  { %863 = vmatpush1.bf16.msra.mxu0 %v420_v61  ;;  %1604 = vmatprep.subr.bf16.mxu1 %v1706_v3  ;;  %v1714_v3 = vld [vmem:[%s2099_s4 + $0xd8] sm:$0xff]  }
 0x130   :  { %864 = vmatprep.subr.bf16.mxu0 %v427_v63  ;;  %v1710_v63 = vld [vmem:[%s2099_s4 + $0xc8] sm:$0xff]  }
 0x132   :  { %1605 = vmatpush3.bf16.msra.mxu1 %v1707_v42  ;;  %v1718_v42 = vld [vmem:[%s2099_s4 + $0xe8] sm:$0xff]  }
 0x133   :  { %865 = vmatpush1.bf16.msra.mxu0 %v426_v4  ;;  %1612 = vmatprep.subr.bf16.mxu1 %v1708_v43  ;;  %v1715_v4 = vld [vmem:[%s2099_s4 + $0x98] sm:$0xff]   ;;  %v1719_v43 = vld [vmem:[%s2099_s4 + $0xa8] sm:$0xff]  }
 0x134   :  { %866 = vmatprep.subr.bf16.mxu0 %v433_v5  ;;  %v1716_v5 = vld [vmem:[%s2099_s4 + $0xe0] sm:$0xff]  }
 0x137   :  { %867 = vmatpush1.bf16.msra.mxu0 %v432_v7  ;;  %v1720_v7 = vld [vmem:[%s2099_s4 + $0xf0] sm:$0xff]  }
 0x138   :  { %868 = vmatprep.subr.bf16.mxu0 %v439_v8  ;;  %v1721_v8 = vld [vmem:[%s2099_s4 + $0xb0] sm:$0xff]  }
 0x13b   :  { %869 = vmatpush1.bf16.msra.mxu0 %v438_v10  ;;  %v1723_v10 = vld [vmem:[%s2099_s4 + $0xb8] sm:$0xff]  }
 0x13c   :  { %870 = vmatprep.subr.bf16.mxu0 %v445_v11  ;;  %v1724_v11 = vld [vmem:[%s2099_s4 + $0x140] sm:$0xff]  }
 0x13f   :  { %871 = vmatpush1.bf16.msra.mxu0 %v444_v13  ;;  %v909_v13 = vsub.s32 3, %v1959_v32 }
 0x140   :  { %872 = vmatprep.subr.bf16.mxu0 %v451_v14  ;;  %v906_v14 = vrot.slane %v1965_v34, %v905_v12 }
 0x141   :  { %v910_v15 = vrot.slane %v1965_v34, %v909_v13  ;;  %v954_v19 = vrot.slane %v1971_v36, %v909_v13 }
 0x143   :  { %873 = vmatpush1.bf16.msra.mxu0 %v450_v16  ;;  %v950_v16 = vrot.slane %v1971_v36, %v905_v12 }
 0x144   :  { %874 = vmatprep.subr.bf16.mxu0 %v457_v17 }
 0x147   :  { %875 = vmatpush1.bf16.msra.mxu0 %v456_v20 }
 0x148   :  { %876 = vmatprep.subr.bf16.mxu0 %v463_v21 }
 0x14b   :  { %877 = vmatpush1.bf16.msra.mxu0 %v462_v23 }
 0x14c   :  { %878 = vmatprep.subr.bf16.mxu0 %v469_v25 }
 0x14f   :  { %879 = vmatpush1.bf16.msra.mxu0 %v468_v28 }
 0x150   :  { %880 = vmatprep.subr.bf16.mxu0 %v475_v29 }
 0x153   :  { %881 = vmatpush1.bf16.msra.mxu0 %v474_v30 }
 0x156   :  { %883 = vmatmul.mubr.bf16.vlgmr.msra.gmra.mrb[4].mxu0 %v1882_v18 }
 0x169   :  { %v626_v18 = vpop.f32.mrb[0].mxu0 }
 0x16a   :  { %v1656_v39 = vadd.f32 %v626_v18, %v1935_v58  ;;  %v628_v50 = vpop.f32.mrb[1].mxu0 }
 0x16b   :  { %v1657_v41 = vadd.f32 %v628_v50, %v1940_v60  ;;  %v630_v44 = vpop.f32.mrb[2].mxu0  ;;  %v1725_v50 = vld [vmem:[%s2099_s4 + $0x100] sm:$0xff]  }
 0x16c   :  { %v925_v24 = vmul.f32 %v1656_v39, %v898_v37  ;;  %v1658_v45 = vadd.f32 %v630_v44, %v1942_v62  ;;  %v632_v46 = vpop.f32.mrb[3].mxu0  ;;  %v1709_v62 = vld [vmem:[%s2099_s4 + $0x80] sm:$0xff]   ;;  %v1728_v44 = vld [vmem:[%s2099_s4 + $0x150] sm:$0xff]  }
 0x16d   :  { %v926_v47 = vmul.f32 %v1657_v41, %v902_v38  ;;  %v1659_v48 = vadd.f32 %v632_v46, %v1944_v0  ;;  %v1711_v0 = vld [vmem:[%s2099_s4 + $0x88] sm:$0xff]   ;;  %v1731_v46 = vld [vmem:[%s2099_s4 + $0x118] sm:$0xff]  }
 0x16e   :  { %v969_v49 = vadd.f32 %v942_v40, %v925_v24  ;;  %v931_v51 = vmul.f32 %v1658_v45, %v898_v37  ;;  %v1726_v41 = vld [vmem:[%s2099_s4 + $0x148] sm:$0xff]   ;;  %v1729_v24 = vld [vmem:[%s2099_s4 + $0x110] sm:$0xff]   ;;  %v1730_v45 = vld [vmem:[%s2099_s4 + $0x158] sm:$0xff]  }
 0x16f   :  { %v970_v52 = vadd.f32 %v946_v27, %v926_v47  ;;  %v932_v53 = vmul.f32 %v1659_v48, %v902_v38  ;;  %v1732_v47 = vld [vmem:[%s2099_s4 + $0x160] sm:$0xff]  }
 0x170   :  { %1740 = vtanh.f32 %v969_v49  ;;  %v975_v54 = vadd.f32 %v942_v40, %v931_v51  ;;  %v1733_v48 = vld [vmem:[%s2099_s4 + $0x120] sm:$0xff]   ;;  %v1734_v49 = vld [vmem:[%s2099_s4 + $0x168] sm:$0xff]  }
 0x171   :  { %1742 = vtanh.f32 %v970_v52  ;;  %v976_v55 = vadd.f32 %v946_v27, %v932_v53  ;;  %v1727_v27 = vld [vmem:[%s2099_s4 + $0x108] sm:$0xff]   ;;  %v1736_v52 = vld [vmem:[%s2099_s4 + $0x170] sm:$0xff]  }
 0x172   :  { %1744 = vtanh.f32 %v975_v54  ;;  %v1735_v51 = vld [vmem:[%s2099_s4 + $0x128] sm:$0xff]   ;;  %v1737_v53 = vld [vmem:[%s2099_s4 + $0x130] sm:$0xff]   ;;  %v1738_v54 = vld [vmem:[%s2099_s4 + $0x178] sm:$0xff]  }
 0x173   :  { %1746 = vtanh.f32 %v976_v55  ;;  %v1739_v55 = vld [vmem:[%s2099_s4 + $0x138] sm:$0xff]  }
 0x17a   :  { %v1741_v56 = vpop.eup %1740 }
 0x17b   :  { %v1743_v57 = vpop.eup %1742 }
 0x17c   :  { %v1745_v58 = vpop.eup %1744 }
 0x17d   :  { %v1747_v59 = vpop.eup %1746  ;;  %v993_v60 = vpack.c.bf16 %v1745_v58, %v1741_v56  ;;  %v913_v56 = vsub.s32 4, %v1959_v32 }
 0x17e   :  { %v994_v61 = vpack.c.bf16 %v1747_v59, %v1743_v57  ;;  %v917_v57 = vsub.s32 5, %v1959_v32 }
 0x17f   :  { %v914_v58 = vrot.slane %v1965_v34, %v913_v56 }
 0x180   :  { %1422 = vmatprep.mubr.bf16.mxu1 %v994_v61  ;;  %v918_v59 = vrot.slane %v1965_v34, %v917_v57 }
 0x181   :  { %1423 = vmatmul.mubr.bf16.vlgmr.msra.gmra.mrb[8].mxu1 %v993_v60  ;;  %v958_v60 = vrot.slane %v1971_v36, %v913_v56 }
 0x182   :  { %1613 = vmatpush3.bf16.msra.mxu1 %v1709_v62  ;;  %v962_v62 = vrot.slane %v1971_v36, %v917_v57 }
 0x183   :  { %1614 = vmatprep.subr.bf16.mxu1 %v1710_v63 }
 0x186   :  { %1615 = vmatpush3.bf16.msra.mxu1 %v1711_v0 }
 0x187   :  { %1616 = vmatprep.subr.bf16.mxu1 %v1712_v1 }
 0x18a   :  { %1617 = vmatpush3.bf16.msra.mxu1 %v1713_v2 }
 0x18b   :  { %1618 = vmatprep.subr.bf16.mxu1 %v1714_v3 }
 0x18e   :  { %1619 = vmatpush3.bf16.msra.mxu1 %v1715_v4 }
 0x18f   :  { %1620 = vmatprep.subr.bf16.mxu1 %v1716_v5 }
 0x192   :  { %1621 = vmatpush3.bf16.msra.mxu1 %v1717_v6 }
 0x193   :  { %1622 = vmatprep.subr.bf16.mxu1 %v1718_v42 }
 0x196   :  { %1623 = vmatpush3.bf16.msra.mxu1 %v1719_v43 }
 0x197   :  { %1624 = vmatprep.subr.bf16.mxu1 %v1720_v7 }
 0x19a   :  { %1625 = vmatpush3.bf16.msra.mxu1 %v1721_v8 }
 0x19b   :  { %1626 = vmatprep.subr.bf16.mxu1 %v1722_v9 }
 0x19e   :  { %1627 = vmatpush3.bf16.msra.mxu1 %v1723_v10 }
 0x19f   :  { %1634 = vmatprep.subr.bf16.mxu1 %v1724_v11 }
 0x1e8   :  { %v755_v17 = vpop.f32.mrb[4].mxu1 }
 0x1e9   :  { %v927_v20 = vmul.f32 %v906_v14, %v755_v17  ;;  %v757_v21 = vpop.f32.mrb[5].mxu1  ;;  %v1539_v17 = vld [vmem:[%s2100_s5] ss:$0 sm:$0xff] }
 0x1ea   :  { %v928_v22 = vmul.f32 %v910_v15, %v757_v21  ;;  %v759_v23 = vpop.f32.mrb[6].mxu1 }
 0x1eb   :  { %v971_v25 = vadd.f32 %v950_v16, %v927_v20  ;;  %v933_v26 = vmul.f32 %v906_v14, %v759_v23  ;;  %v761_v28 = vpop.f32.mrb[7].mxu1 }
 0x1ec   :  { %v972_v29 = vadd.f32 %v954_v19, %v928_v22  ;;  %v934_v30 = vmul.f32 %v910_v15, %v761_v28 }
 0x1ed   :  { %1748 = vtanh.f32 %v971_v25  ;;  %v977_v31 = vadd.f32 %v950_v16, %v933_v26 }
 0x1ee   :  { %1750 = vtanh.f32 %v972_v29  ;;  %v978_v33 = vadd.f32 %v954_v19, %v934_v30 }
 0x1ef   :  { %1752 = vtanh.f32 %v977_v31 }
 0x1f0   :  { %1754 = vtanh.f32 %v978_v33 }
 0x1f7   :  { %v1749_v35 = vpop.eup %1748 }
 0x1f8   :  { %v1751_v37 = vpop.eup %1750 }
 0x1f9   :  { %v1753_v18 = vpop.eup %1752 }
 0x1fa   :  { %v1755_v38 = vpop.eup %1754  ;;  %v995_v39 = vpack.c.bf16 %v1753_v18, %v1749_v35 }
 0x1fb   :  { %v996_v40 = vpack.c.bf16 %v1755_v38, %v1751_v37 }
 0x1fd   :  { %1463 = vmatprep.mubr.bf16.mxu1 %v996_v40 }
 0x1fe   :  { %1464 = vmatmul.mubr.bf16.vlgmr.msra.gmra.mrb[12].mxu1 %v995_v39 }
 0x1ff   :  { %1635 = vmatpush3.bf16.msra.mxu1 %v1725_v50 }
 0x200   :  { %1636 = vmatprep.subr.bf16.mxu1 %v1726_v41 }
 0x203   :  { %1637 = vmatpush3.bf16.msra.mxu1 %v1727_v27 }
 0x204   :  { %1638 = vmatprep.subr.bf16.mxu1 %v1728_v44 }
 0x207   :  { %1639 = vmatpush3.bf16.msra.mxu1 %v1729_v24 }
 0x208   :  { %1640 = vmatprep.subr.bf16.mxu1 %v1730_v45 }
 0x20b   :  { %1641 = vmatpush3.bf16.msra.mxu1 %v1731_v46 }
 0x20c   :  { %1642 = vmatprep.subr.bf16.mxu1 %v1732_v47 }
 0x20f   :  { %1643 = vmatpush3.bf16.msra.mxu1 %v1733_v48 }
 0x210   :  { %1644 = vmatprep.subr.bf16.mxu1 %v1734_v49 }
 0x213   :  { %1645 = vmatpush3.bf16.msra.mxu1 %v1735_v51 }
 0x214   :  { %1646 = vmatprep.subr.bf16.mxu1 %v1736_v52 }
 0x217   :  { %1647 = vmatpush3.bf16.msra.mxu1 %v1737_v53 }
 0x218   :  { %1648 = vmatprep.subr.bf16.mxu1 %v1738_v54 }
 0x21b   :  { %1649 = vmatpush3.bf16.msra.mxu1 %v1739_v55 }
 0x229   :  { %v884_v61 = vpop.f32.mrb[4].mxu0 }
 0x22a   :  { %v929_v63 = vmul.f32 %v914_v58, %v884_v61  ;;  %v886_v0 = vpop.f32.mrb[5].mxu0 }
 0x22b   :  { %v930_v1 = vmul.f32 %v918_v59, %v886_v0  ;;  %v888_v2 = vpop.f32.mrb[6].mxu0 }
 0x22c   :  { %v973_v3 = vadd.f32 %v958_v60, %v929_v63  ;;  %v935_v4 = vmul.f32 %v914_v58, %v888_v2  ;;  %v890_v5 = vpop.f32.mrb[7].mxu0 }
 0x22d   :  { %v974_v6 = vadd.f32 %v962_v62, %v930_v1  ;;  %v936_v42 = vmul.f32 %v918_v59, %v890_v5 }
 0x22e   :  { %1756 = vtanh.f32 %v973_v3  ;;  %v979_v32 = vadd.f32 %v958_v60, %v935_v4 }
 0x22f   :  { %1758 = vtanh.f32 %v974_v6  ;;  %v980_v43 = vadd.f32 %v962_v62, %v936_v42 }
 0x230   :  { %1760 = vtanh.f32 %v979_v32 }
 0x231   :  { %1762 = vtanh.f32 %v980_v43 }
 0x238   :  { %v1757_v34 = vpop.eup %1756 }
 0x239   :  { %v1759_v7 = vpop.eup %1758 }
 0x23a   :  { %v1761_v8 = vpop.eup %1760 }
 0x23b   :  { %v1763_v9 = vpop.eup %1762  ;;  %v997_v36 = vpack.c.bf16 %v1761_v8, %v1757_v34 }
 0x23c   :  { %v998_v10 = vpack.c.bf16 %v1763_v9, %v1759_v7 }
 0x23e   :  { %1504 = vmatprep.mubr.bf16.mxu1 %v998_v10 }
 0x23f   :  { %1505 = vmatmul.mubr.bf16.vlgmr.msra.gmra.mrb[16].mxu1 %v997_v36 }
 0x254   :  { %v1606_v11 = vpop.f32.mrb[8].mxu1 }
 0x255   :  { %v1607_v12 = vpop.f32.mrb[9].mxu1 }
 0x256   :  { %v1608_v13 = vadd.f32 %v1607_v12, %v1606_v11  ;;  %v1609_v14 = vpop.f32.mrb[10].mxu1 }
 0x257   :  { %v1610_v15 = vpop.f32.mrb[11].mxu1 }
 0x258   :  { %v1611_v16 = vadd.f32 %v1610_v15, %v1609_v14  ;;  %v1425_v21 = vadd.f32 %v1608_v13, %v1539_v17 }
 0x25a   :  { %v1428_v26 = vadd.f32 %v1611_v16, %v1539_v17 }
 0x2d1   :  { %v1628_v19 = vpop.f32.mrb[12].mxu1 }
 0x2d2   :  { %v1629_v20 = vpop.f32.mrb[13].mxu1 }
 0x2d3   :  { %v1630_v22 = vadd.f32 %v1629_v20, %v1628_v19  ;;  %v1631_v23 = vpop.f32.mrb[14].mxu1 }
 0x2d4   :  { %v1632_v25 = vpop.f32.mrb[15].mxu1 }
 0x2d5   :  { %v1466_v28 = vadd.f32 %v1630_v22, %v1425_v21  ;;  %v1633_v29 = vadd.f32 %v1632_v25, %v1631_v23 }
 0x2d7   :  { %v1469_v30 = vadd.f32 %v1633_v29, %v1428_v26 }
 0x312   :  { %v1650_v31 = vpop.f32.mrb[16].mxu1 }
 0x313   :  { %v1651_v33 = vpop.f32.mrb[17].mxu1 }
 0x314   :  { %v1652_v35 = vadd.f32 %v1651_v33, %v1650_v31  ;;  %v1653_v37 = vpop.f32.mrb[18].mxu1 }
 0x315   :  { %v1654_v18 = vpop.f32.mrb[19].mxu1 }
 0x316   :  { %v1507_v38 = vadd.f32 %v1652_v35, %v1466_v28  ;;  %v1655_v39 = vadd.f32 %v1654_v18, %v1653_v37 }
 0x318   :  { %v1588_v40 = vmul.f32 -1.442695, %v1507_v38  ;;  %v1510_v50 = vadd.f32 %v1655_v39, %v1469_v30 }
 0x31a   :  { %1764 = vpow2.f32 %v1588_v40  ;;  %v1589_v41 = vmul.f32 -1.442695, %v1510_v50 }
 0x31c   :  { %1766 = vpow2.f32 %v1589_v41 }
 0x324   :  { %v1765_v27 = vpop.eup %1764 }
 0x325   :  { %v1519_v44 = vadd.f32 1.0, %v1765_v27 }
 0x326   :  { %v1767_v24 = vpop.eup %1766 }
 0x327   :  { %1768 = vrcp.f32 %v1519_v44  ;;  %v1520_v45 = vadd.f32 1.0, %v1767_v24 }
 0x329   :  { %1770 = vrcp.f32 %v1520_v45 }
 0x331   :  { %v1769_v46 = vpop.eup %1768 }
 0x332   :  { %1526 = vst.msk [vmem:[%s2101_s6] sm:$0xff] %vm1525_vm0, %v1769_v46 }
 0x333   :  { %v1771_v47 = vpop.eup %1770 }
 0x334   :  { %1527 = vst.msk [vmem:[%s2101_s6 + $0x8] sm:$0xff] %vm1525_vm0, %v1771_v47 }
 0x335   :  { %1532 = vsyncpa [#allocation3], 1 }

</bundles_post_ra>
